<compile_context>
chip_gen: v6e
topology: v6e:2x2x1
jax: 0.10.0
libtpu: 0.0.40
codegen_flags: <defaults>
</compile_context>

<pallas_src>
from functools import partial

import jax
import jax.numpy as jnp
from jax.experimental import pallas as pl
from jax.experimental.pallas import tpu as pltpu

C_IN = 3
C_OUT = 16
KH = KW = 3
PATCH = C_IN * KH * KW          # 27 im2col elements per pixel
PACKED_K = 128                  # 4 quadrants * 27 = 108, padded to 128
BIAS_ROW = 4 * PATCH            # constant-1 row that carries the conv bias
POOLED = 16 * 16                # 256 pooled spatial positions per image
NC_PAD = 128                    # classes padded 10 -> 128 (lane-dense output)


# ----------------------------- Pallas kernel -------------------------------

def fused_convnet_kernel(pt_ref, wc_ref, w3_ref, bf_ref, out_ref, pooled_ref):
    # pt_ref    : (B_TILE, 128, 256) packed patches; sublane = q*27 + patch_elem
    #             (row 108 == 1.0 carries the conv bias), lane = pooled position.
    # wc_ref    : (64, 128)          block-diagonal conv weight (+ bias col 108).
    # w3_ref    : (16, 256, 128)     FC weight as (channel, pooled pos, padded class).
    # bf_ref    : (1, 128)           padded FC bias (always f32).
    # out_ref   : (1, B_TILE, 128)   padded logits for this tile (f32).
    # pooled_ref: (B_TILE, 16, 256)  VMEM scratch, f32 ReLU'd max-pooled features.
    b_tile = pt_ref.shape[0]

    # --- conv (+bias) + 2x2 max-pool + ReLU, one image at a time ------------
    # Each image is ONE (64,128)@(128,256) MXU matmul covering all 4 pool
    # quadrants; the pool is a max over the four aligned 16-row quadrant groups,
    # ReLU hoisted after the max (exact: ReLU monotone, bias quadrant-invariant).
    for b in range(b_tile):                                     # static unroll
        y = jnp.dot(wc_ref[...], pt_ref[b],
                    preferred_element_type=jnp.float32)         # (64, 256)
        m = jnp.maximum(jnp.maximum(y[0:16, :], y[16:32, :]),
                        jnp.maximum(y[32:48, :], y[48:64, :]))
        pooled_ref[b] = jnp.maximum(m, 0.0)                     # (16, 256)

    # --- FC: 16 accumulated (B_TILE,256)@(256,128) MXU matmuls --------------
    # M = B_TILE (not 1): each per-channel LHS gathers that channel's row from
    # every image of the tile; the FC weight streams through the MXU once/tile.
    acc = jnp.zeros((b_tile, NC_PAD), jnp.float32)
    for c in range(C_OUT):                                      # static unroll
        lhs = pooled_ref[:, c, :].astype(w3_ref.dtype)          # (B_TILE, 256)
        acc = acc + jnp.dot(lhs, w3_ref[c],
                            preferred_element_type=jnp.float32)
    out_ref[0] = acc + bf_ref[...]                              # (B_TILE, 128)


# ----------------------------- glue (plain JAX) ----------------------------

def _pack_patches(x_nchw):
    """(B,3,32,32) NCHW -> (B,128,256) transposed, quadrant-packed im2col."""
    b = x_nchw.shape[0]
    x = jnp.transpose(x_nchw, (0, 2, 3, 1))                    # NHWC
    xp = jnp.pad(x, ((0, 0), (1, 1), (1, 1), (0, 0)))          # padding = 1
    slabs = [xp[:, kh:kh + 32, kw:kw + 32, :]
             for kh in range(KH) for kw in range(KW)]
    p = jnp.stack(slabs, axis=3).reshape(b, 32, 32, PATCH)     # j = kh*9+kw*3+ci
    p = p.reshape(b, 16, 2, 16, 2, PATCH)                      # (b,hp,dh,wp,dw,j)
    p = jnp.transpose(p, (0, 2, 4, 5, 1, 3))                   # (b,dh,dw,j,hp,wp)
    p = p.reshape(b, 4 * PATCH, POOLED)                        # (b, q*27+j, r)
    p = jnp.pad(p, ((0, 0), (0, PACKED_K - 4 * PATCH), (0, 0)))
    return p.at[:, BIAS_ROW, :].set(1.0)                       # bias row


def _pack_conv_weight(conv_w, conv_b):
    """(16,3,3,3) OIHW + (16,) bias -> block-diagonal (64,128)."""
    w_col = jnp.transpose(conv_w, (2, 3, 1, 0)).reshape(PATCH, C_OUT)  # (27,16)
    wc = jnp.zeros((4 * C_OUT, PACKED_K), jnp.float32)
    for q in range(4):
        wc = wc.at[q * C_OUT:(q + 1) * C_OUT,
                   q * PATCH:(q + 1) * PATCH].set(w_col.T)
    # bias rides the MXU: multiplies the constant-1 patch row.
    return wc.at[:, BIAS_ROW].set(jnp.tile(conv_b, 4))


def _pack_fc(fc_w, fc_b):
    """(nc,4096),(nc,) -> (16,256,128),(1,128), classes zero-padded to 128."""
    nc = fc_w.shape[0]
    w_pad = jnp.zeros((NC_PAD, C_OUT * POOLED), jnp.float32).at[:nc, :].set(fc_w)
    w3 = jnp.transpose(w_pad, (1, 0)).reshape(C_OUT, POOLED, NC_PAD)
    b_pad = jnp.zeros((1, NC_PAD), jnp.float32).at[0, :nc].set(fc_b)
    return w3, b_pad


def _cdiv(a, b):
    return (a + b - 1) // b


@partial(jax.jit, static_argnames=("block_b", "compute_dtype"))
def simple_convnet_forward(x_nchw, conv_w, conv_b, fc_w, fc_b,
                           *, block_b=16, compute_dtype=jnp.float32):
    B = x_nchw.shape[0]
    nc = fc_w.shape[0]

    # Batch tile: as large as block_b, but keep >= 2 grid steps when B >= 2 so
    # the parallel grid axis can be split across v7x's two TensorCores.
    bt = max(1, min(block_b, B // 2)) if B >= 2 else 1
    n_tiles = _cdiv(B, bt)
    b_pad = n_tiles * bt
    x_nchw = jnp.pad(x_nchw, ((0, b_pad - B), (0, 0), (0, 0), (0, 0)))

    patches = _pack_patches(x_nchw).astype(compute_dtype)      # (b_pad, 128, 256)
    wc = _pack_conv_weight(conv_w, conv_b).astype(compute_dtype)
    w3, bf = _pack_fc(fc_w, fc_b)                              # f32
    w3 = w3.astype(compute_dtype)                              # FC bias stays f32

    out = pl.pallas_call(
        fused_convnet_kernel,
        out_shape=jax.ShapeDtypeStruct((n_tiles, bt, NC_PAD), jnp.float32),
        grid=(n_tiles,),
        in_specs=[
            # streaming per-tile patch slab: keep default double-buffering
            pl.BlockSpec((bt, PACKED_K, POOLED), lambda i: (i, 0, 0)),
            # grid-invariant weights: single-buffered (constant index_map)
            pl.BlockSpec((4 * C_OUT, PACKED_K), lambda i: (0, 0),
                         pipeline_mode=pl.Buffered(1)),
            pl.BlockSpec((C_OUT, POOLED, NC_PAD), lambda i: (0, 0, 0),
                         pipeline_mode=pl.Buffered(1)),
            pl.BlockSpec((1, NC_PAD), lambda i: (0, 0),
                         pipeline_mode=pl.Buffered(1)),
        ],
        out_specs=pl.BlockSpec((1, bt, NC_PAD), lambda i: (i, 0, 0)),
        scratch_shapes=[pltpu.VMEM((bt, C_OUT, POOLED), jnp.float32)],
        compiler_params=pltpu.CompilerParams(
            dimension_semantics=("parallel",),
            vmem_limit_bytes=32 * 1024 * 1024),
    )(patches, wc, w3, bf)

    return out.reshape(b_pad, NC_PAD)[:B, :nc]


# ----------------------------- reference & setup ---------------------------

def reference_forward(x, conv_w, conv_b, fc_w, fc_b):
    """Pure-JAX f32 reference matching the PyTorch module exactly."""
    y = jax.lax.conv_general_dilated(
        x, conv_w, window_strides=(1, 1), padding=((1, 1), (1, 1)),
        dimension_numbers=("NCHW", "OIHW", "NCHW"))
    y = y + conv_b[None, :, None, None]
    y = jnp.maximum(y, 0.0)
    y = jax.lax.reduce_window(y, -jnp.inf, jax.lax.max,
                              (1, 1, 2, 2), (1, 1, 2, 2), "VALID")
    y = y.reshape(y.shape[0], -1)
    return y @ fc_w.T + fc_b


def init_params(key, num_classes=10):
    k1, k2, k3, k4 = jax.random.split(key, 4)
    conv_w = 0.1 * jax.random.normal(k1, (C_OUT, C_IN, KH, KW), jnp.float32)
    conv_b = 0.1 * jax.random.normal(k2, (C_OUT,), jnp.float32)
    fc_w = 0.01 * jax.random.normal(k3, (num_classes, C_OUT * POOLED), jnp.float32)
    fc_b = 0.1 * jax.random.normal(k4, (num_classes,), jnp.float32)
    return conv_w, conv_b, fc_w, fc_b


if __name__ == "__main__":
    key = jax.random.PRNGKey(0)
    kx1, kx2, kp = jax.random.split(key, 3)
    conv_w, conv_b, fc_w, fc_b = init_params(kp, num_classes=10)

    # Nominal small case from the spec: B=2, 3x32x32 (fc1 = Linear(16*16*16, 10)
    # implies 32x32 input).  -> B_TILE=1, grid=(2,) (two steps -> both v7x TCs).
    x2 = jax.random.normal(kx1, (2, 3, 32, 32), jnp.float32)
    out2 = jax.block_until_ready(
        simple_convnet_forward(x2, conv_w, conv_b, fc_w, fc_b))
    assert out2.shape == (2, 10) and out2.dtype == jnp.float32
    ref2 = reference_forward(x2, conv_w, conv_b, fc_w, fc_b)
    assert jnp.allclose(out2, ref2, rtol=1e-3, atol=1e-3), "B=2 mismatch vs reference"

    # Batch-tiled path: B=16 -> B_TILE=8, grid=(2,), FC matmuls with M=8.
    x16 = jax.random.normal(kx2, (16, 3, 32, 32), jnp.float32)
    out16 = jax.block_until_ready(
        simple_convnet_forward(x16, conv_w, conv_b, fc_w, fc_b))
    ref16 = reference_forward(x16, conv_w, conv_b, fc_w, fc_b)
    assert jnp.allclose(out16, ref16, rtol=1e-3, atol=1e-3), "B=16 mismatch vs reference"

    # bf16 MXU-operand path (perf review item #3), f32 accumulate, bf16 tolerance.
    out_bf16 = jax.block_until_ready(
        simple_convnet_forward(x16, conv_w, conv_b, fc_w, fc_b,
                               compute_dtype=jnp.bfloat16))
    assert jnp.allclose(out_bf16, ref16, rtol=2e-2, atol=2e-2), "bf16 mismatch vs reference"

    print("KERNEL_OK")
</pallas_src>

<mosaic_0001>
module attributes {stable_mosaic.version = 11 : i64} {
  func.func @fused_convnet_kernel(%arg0: i32, %arg1: memref<1x128x256xf32, #tpu.memory_space<vmem>>, %arg2: memref<64x128xf32, #tpu.memory_space<vmem>>, %arg3: memref<16x256x128xf32, #tpu.memory_space<vmem>>, %arg4: memref<1x128xf32, #tpu.memory_space<vmem>>, %arg5: memref<1x1x128xf32, #tpu.memory_space<vmem>>, %arg6: memref<1x16x256xf32, #tpu.memory_space<vmem>>) attributes {dimension_semantics = [#tpu.dimension_semantics<parallel>], iteration_bounds = array<i64: 2>, scalar_prefetch = 0 : i64, scratch_operands = 1 : i64, tpu.core_type = #tpu.core_type<tc>, window_params = [{transform_indices = @transform_0, window_bounds = array<i64: 1, 128, 256>}, {pipeline_mode = #tpu.pipeline_mode<synchronous>, transform_indices = @transform_1, window_bounds = array<i64: 64, 128>}, {pipeline_mode = #tpu.pipeline_mode<synchronous>, transform_indices = @transform_2, window_bounds = array<i64: 16, 256, 128>}, {pipeline_mode = #tpu.pipeline_mode<synchronous>, transform_indices = @transform_3, window_bounds = array<i64: 1, 128>}, {transform_indices = @transform_4, window_bounds = array<i64: 1, 1, 128>}]} {
    %c0 = arith.constant 0 : index
    %c0_0 = arith.constant 0 : index
    %0 = vector.load %arg2[%c0, %c0_0] : memref<64x128xf32, #tpu.memory_space<vmem>>, vector<64x128xf32>
    %c0_1 = arith.constant 0 : index
    %c0_2 = arith.constant 0 : index
    %c0_3 = arith.constant 0 : index
    %1 = vector.load %arg1[%c0_1, %c0_2, %c0_3] : memref<1x128x256xf32, #tpu.memory_space<vmem>>, vector<1x128x256xf32>
    %2 = vector.shape_cast %1 : vector<1x128x256xf32> to vector<128x256xf32>
    %cst = arith.constant dense<0.000000e+00> : vector<64x256xf32>
    %3 = tpu.matmul %0, %2, %cst {dimension_numbers = #tpu.dot_dimension_numbers<[1], [0], [0], [1], [0, 0, 1, 1], [], []>} : vector<64x128xf32>, vector<128x256xf32>, vector<64x256xf32> -> vector<64x256xf32>
    %4 = vector.extract_strided_slice %3 {offsets = [0, 0], sizes = [16, 256], strides = [1, 1]} : vector<64x256xf32> to vector<16x256xf32>
    %5 = vector.extract_strided_slice %3 {offsets = [16, 0], sizes = [16, 256], strides = [1, 1]} : vector<64x256xf32> to vector<16x256xf32>
    %6 = arith.maximumf %4, %5 : vector<16x256xf32>
    %7 = vector.extract_strided_slice %3 {offsets = [32, 0], sizes = [16, 256], strides = [1, 1]} : vector<64x256xf32> to vector<16x256xf32>
    %8 = vector.extract_strided_slice %3 {offsets = [48, 0], sizes = [16, 256], strides = [1, 1]} : vector<64x256xf32> to vector<16x256xf32>
    %9 = arith.maximumf %7, %8 : vector<16x256xf32>
    %10 = arith.maximumf %6, %9 : vector<16x256xf32>
    %cst_4 = arith.constant 0.000000e+00 : f32
    %11 = vector.broadcast %cst_4 : f32 to vector<16x256xf32>
    %12 = arith.maximumf %10, %11 : vector<16x256xf32>
    %c0_5 = arith.constant 0 : index
    %c0_6 = arith.constant 0 : index
    %c0_7 = arith.constant 0 : index
    %13 = vector.load %arg6[%c0_5, %c0_6, %c0_7] : memref<1x16x256xf32, #tpu.memory_space<vmem>>, vector<1x16x256xf32>
    %14 = vector.shape_cast %13 : vector<1x16x256xf32> to vector<16x256xf32>
    %15 = vector.shape_cast %12 : vector<16x256xf32> to vector<1x16x256xf32>
    tpu.vector_store %arg6[%c0_5, %c0_6, %c0_7], %15 {strides = array<i32>} : memref<1x16x256xf32, #tpu.memory_space<vmem>>, vector<1x16x256xf32>,
    %cst_8 = arith.constant 0.000000e+00 : f32
    %16 = vector.broadcast %cst_8 : f32 to vector<1x128xf32>
    %c0_9 = arith.constant 0 : index
    %c0_10 = arith.constant 0 : index
    %c0_11 = arith.constant 0 : index
    %17 = vector.load %arg6[%c0_9, %c0_10, %c0_11] : memref<1x16x256xf32, #tpu.memory_space<vmem>>, vector<1x1x256xf32>
    %18 = vector.shape_cast %17 : vector<1x1x256xf32> to vector<1x256xf32>
    %c0_12 = arith.constant 0 : index
    %c0_13 = arith.constant 0 : index
    %c0_14 = arith.constant 0 : index
    %19 = vector.load %arg3[%c0_12, %c0_13, %c0_14] : memref<16x256x128xf32, #tpu.memory_space<vmem>>, vector<1x256x128xf32>
    %20 = vector.shape_cast %19 : vector<1x256x128xf32> to vector<256x128xf32>
    %cst_15 = arith.constant dense<0.000000e+00> : vector<1x128xf32>
    %21 = tpu.matmul %18, %20, %cst_15 {dimension_numbers = #tpu.dot_dimension_numbers<[1], [0], [0], [1], [0, 0, 1, 1], [], []>} : vector<1x256xf32>, vector<256x128xf32>, vector<1x128xf32> -> vector<1x128xf32>
    %22 = arith.addf %16, %21 : vector<1x128xf32>
    %c0_16 = arith.constant 0 : index
    %c1 = arith.constant 1 : index
    %c0_17 = arith.constant 0 : index
    %23 = vector.load %arg6[%c0_16, %c1, %c0_17] : memref<1x16x256xf32, #tpu.memory_space<vmem>>, vector<1x1x256xf32>
    %24 = vector.shape_cast %23 : vector<1x1x256xf32> to vector<1x256xf32>
    %c1_18 = arith.constant 1 : index
    %c0_19 = arith.constant 0 : index
    %c0_20 = arith.constant 0 : index
    %25 = vector.load %arg3[%c1_18, %c0_19, %c0_20] : memref<16x256x128xf32, #tpu.memory_space<vmem>>, vector<1x256x128xf32>
    %26 = vector.shape_cast %25 : vector<1x256x128xf32> to vector<256x128xf32>
    %cst_21 = arith.constant dense<0.000000e+00> : vector<1x128xf32>
    %27 = tpu.matmul %24, %26, %cst_21 {dimension_numbers = #tpu.dot_dimension_numbers<[1], [0], [0], [1], [0, 0, 1, 1], [], []>} : vector<1x256xf32>, vector<256x128xf32>, vector<1x128xf32> -> vector<1x128xf32>
    %28 = arith.addf %22, %27 : vector<1x128xf32>
    %c0_22 = arith.constant 0 : index
    %c2 = arith.constant 2 : index
    %c0_23 = arith.constant 0 : index
    %29 = vector.load %arg6[%c0_22, %c2, %c0_23] : memref<1x16x256xf32, #tpu.memory_space<vmem>>, vector<1x1x256xf32>
    %30 = vector.shape_cast %29 : vector<1x1x256xf32> to vector<1x256xf32>
    %c2_24 = arith.constant 2 : index
    %c0_25 = arith.constant 0 : index
    %c0_26 = arith.constant 0 : index
    %31 = vector.load %arg3[%c2_24, %c0_25, %c0_26] : memref<16x256x128xf32, #tpu.memory_space<vmem>>, vector<1x256x128xf32>
    %32 = vector.shape_cast %31 : vector<1x256x128xf32> to vector<256x128xf32>
    %cst_27 = arith.constant dense<0.000000e+00> : vector<1x128xf32>
    %33 = tpu.matmul %30, %32, %cst_27 {dimension_numbers = #tpu.dot_dimension_numbers<[1], [0], [0], [1], [0, 0, 1, 1], [], []>} : vector<1x256xf32>, vector<256x128xf32>, vector<1x128xf32> -> vector<1x128xf32>
    %34 = arith.addf %28, %33 : vector<1x128xf32>
    %c0_28 = arith.constant 0 : index
    %c3 = arith.constant 3 : index
    %c0_29 = arith.constant 0 : index
    %35 = vector.load %arg6[%c0_28, %c3, %c0_29] : memref<1x16x256xf32, #tpu.memory_space<vmem>>, vector<1x1x256xf32>
    %36 = vector.shape_cast %35 : vector<1x1x256xf32> to vector<1x256xf32>
    %c3_30 = arith.constant 3 : index
    %c0_31 = arith.constant 0 : index
    %c0_32 = arith.constant 0 : index
    %37 = vector.load %arg3[%c3_30, %c0_31, %c0_32] : memref<16x256x128xf32, #tpu.memory_space<vmem>>, vector<1x256x128xf32>
    %38 = vector.shape_cast %37 : vector<1x256x128xf32> to vector<256x128xf32>
    %cst_33 = arith.constant dense<0.000000e+00> : vector<1x128xf32>
    %39 = tpu.matmul %36, %38, %cst_33 {dimension_numbers = #tpu.dot_dimension_numbers<[1], [0], [0], [1], [0, 0, 1, 1], [], []>} : vector<1x256xf32>, vector<256x128xf32>, vector<1x128xf32> -> vector<1x128xf32>
    %40 = arith.addf %34, %39 : vector<1x128xf32>
    %c0_34 = arith.constant 0 : index
    %c4 = arith.constant 4 : index
    %c0_35 = arith.constant 0 : index
    %41 = vector.load %arg6[%c0_34, %c4, %c0_35] : memref<1x16x256xf32, #tpu.memory_space<vmem>>, vector<1x1x256xf32>
    %42 = vector.shape_cast %41 : vector<1x1x256xf32> to vector<1x256xf32>
    %c4_36 = arith.constant 4 : index
    %c0_37 = arith.constant 0 : index
    %c0_38 = arith.constant 0 : index
    %43 = vector.load %arg3[%c4_36, %c0_37, %c0_38] : memref<16x256x128xf32, #tpu.memory_space<vmem>>, vector<1x256x128xf32>
    %44 = vector.shape_cast %43 : vector<1x256x128xf32> to vector<256x128xf32>
    %cst_39 = arith.constant dense<0.000000e+00> : vector<1x128xf32>
    %45 = tpu.matmul %42, %44, %cst_39 {dimension_numbers = #tpu.dot_dimension_numbers<[1], [0], [0], [1], [0, 0, 1, 1], [], []>} : vector<1x256xf32>, vector<256x128xf32>, vector<1x128xf32> -> vector<1x128xf32>
    %46 = arith.addf %40, %45 : vector<1x128xf32>
    %c0_40 = arith.constant 0 : index
    %c5 = arith.constant 5 : index
    %c0_41 = arith.constant 0 : index
    %47 = vector.load %arg6[%c0_40, %c5, %c0_41] : memref<1x16x256xf32, #tpu.memory_space<vmem>>, vector<1x1x256xf32>
    %48 = vector.shape_cast %47 : vector<1x1x256xf32> to vector<1x256xf32>
    %c5_42 = arith.constant 5 : index
    %c0_43 = arith.constant 0 : index
    %c0_44 = arith.constant 0 : index
    %49 = vector.load %arg3[%c5_42, %c0_43, %c0_44] : memref<16x256x128xf32, #tpu.memory_space<vmem>>, vector<1x256x128xf32>
    %50 = vector.shape_cast %49 : vector<1x256x128xf32> to vector<256x128xf32>
    %cst_45 = arith.constant dense<0.000000e+00> : vector<1x128xf32>
    %51 = tpu.matmul %48, %50, %cst_45 {dimension_numbers = #tpu.dot_dimension_numbers<[1], [0], [0], [1], [0, 0, 1, 1], [], []>} : vector<1x256xf32>, vector<256x128xf32>, vector<1x128xf32> -> vector<1x128xf32>
    %52 = arith.addf %46, %51 : vector<1x128xf32>
    %c0_46 = arith.constant 0 : index
    %c6 = arith.constant 6 : index
    %c0_47 = arith.constant 0 : index
    %53 = vector.load %arg6[%c0_46, %c6, %c0_47] : memref<1x16x256xf32, #tpu.memory_space<vmem>>, vector<1x1x256xf32>
    %54 = vector.shape_cast %53 : vector<1x1x256xf32> to vector<1x256xf32>
    %c6_48 = arith.constant 6 : index
    %c0_49 = arith.constant 0 : index
    %c0_50 = arith.constant 0 : index
    %55 = vector.load %arg3[%c6_48, %c0_49, %c0_50] : memref<16x256x128xf32, #tpu.memory_space<vmem>>, vector<1x256x128xf32>
    %56 = vector.shape_cast %55 : vector<1x256x128xf32> to vector<256x128xf32>
    %cst_51 = arith.constant dense<0.000000e+00> : vector<1x128xf32>
    %57 = tpu.matmul %54, %56, %cst_51 {dimension_numbers = #tpu.dot_dimension_numbers<[1], [0], [0], [1], [0, 0, 1, 1], [], []>} : vector<1x256xf32>, vector<256x128xf32>, vector<1x128xf32> -> vector<1x128xf32>
    %58 = arith.addf %52, %57 : vector<1x128xf32>
    %c0_52 = arith.constant 0 : index
    %c7 = arith.constant 7 : index
    %c0_53 = arith.constant 0 : index
    %59 = vector.load %arg6[%c0_52, %c7, %c0_53] : memref<1x16x256xf32, #tpu.memory_space<vmem>>, vector<1x1x256xf32>
    %60 = vector.shape_cast %59 : vector<1x1x256xf32> to vector<1x256xf32>
    %c7_54 = arith.constant 7 : index
    %c0_55 = arith.constant 0 : index
    %c0_56 = arith.constant 0 : index
    %61 = vector.load %arg3[%c7_54, %c0_55, %c0_56] : memref<16x256x128xf32, #tpu.memory_space<vmem>>, vector<1x256x128xf32>
    %62 = vector.shape_cast %61 : vector<1x256x128xf32> to vector<256x128xf32>
    %cst_57 = arith.constant dense<0.000000e+00> : vector<1x128xf32>
    %63 = tpu.matmul %60, %62, %cst_57 {dimension_numbers = #tpu.dot_dimension_numbers<[1], [0], [0], [1], [0, 0, 1, 1], [], []>} : vector<1x256xf32>, vector<256x128xf32>, vector<1x128xf32> -> vector<1x128xf32>
    %64 = arith.addf %58, %63 : vector<1x128xf32>
    %c0_58 = arith.constant 0 : index
    %c8 = arith.constant 8 : index
    %c0_59 = arith.constant 0 : index
    %65 = vector.load %arg6[%c0_58, %c8, %c0_59] : memref<1x16x256xf32, #tpu.memory_space<vmem>>, vector<1x1x256xf32>
    %66 = vector.shape_cast %65 : vector<1x1x256xf32> to vector<1x256xf32>
    %c8_60 = arith.constant 8 : index
    %c0_61 = arith.constant 0 : index
    %c0_62 = arith.constant 0 : index
    %67 = vector.load %arg3[%c8_60, %c0_61, %c0_62] : memref<16x256x128xf32, #tpu.memory_space<vmem>>, vector<1x256x128xf32>
    %68 = vector.shape_cast %67 : vector<1x256x128xf32> to vector<256x128xf32>
    %cst_63 = arith.constant dense<0.000000e+00> : vector<1x128xf32>
    %69 = tpu.matmul %66, %68, %cst_63 {dimension_numbers = #tpu.dot_dimension_numbers<[1], [0], [0], [1], [0, 0, 1, 1], [], []>} : vector<1x256xf32>, vector<256x128xf32>, vector<1x128xf32> -> vector<1x128xf32>
    %70 = arith.addf %64, %69 : vector<1x128xf32>
    %c0_64 = arith.constant 0 : index
    %c9 = arith.constant 9 : index
    %c0_65 = arith.constant 0 : index
    %71 = vector.load %arg6[%c0_64, %c9, %c0_65] : memref<1x16x256xf32, #tpu.memory_space<vmem>>, vector<1x1x256xf32>
    %72 = vector.shape_cast %71 : vector<1x1x256xf32> to vector<1x256xf32>
    %c9_66 = arith.constant 9 : index
    %c0_67 = arith.constant 0 : index
    %c0_68 = arith.constant 0 : index
    %73 = vector.load %arg3[%c9_66, %c0_67, %c0_68] : memref<16x256x128xf32, #tpu.memory_space<vmem>>, vector<1x256x128xf32>
    %74 = vector.shape_cast %73 : vector<1x256x128xf32> to vector<256x128xf32>
    %cst_69 = arith.constant dense<0.000000e+00> : vector<1x128xf32>
    %75 = tpu.matmul %72, %74, %cst_69 {dimension_numbers = #tpu.dot_dimension_numbers<[1], [0], [0], [1], [0, 0, 1, 1], [], []>} : vector<1x256xf32>, vector<256x128xf32>, vector<1x128xf32> -> vector<1x128xf32>
    %76 = arith.addf %70, %75 : vector<1x128xf32>
    %c0_70 = arith.constant 0 : index
    %c10 = arith.constant 10 : index
    %c0_71 = arith.constant 0 : index
    %77 = vector.load %arg6[%c0_70, %c10, %c0_71] : memref<1x16x256xf32, #tpu.memory_space<vmem>>, vector<1x1x256xf32>
    %78 = vector.shape_cast %77 : vector<1x1x256xf32> to vector<1x256xf32>
    %c10_72 = arith.constant 10 : index
    %c0_73 = arith.constant 0 : index
    %c0_74 = arith.constant 0 : index
    %79 = vector.load %arg3[%c10_72, %c0_73, %c0_74] : memref<16x256x128xf32, #tpu.memory_space<vmem>>, vector<1x256x128xf32>
    %80 = vector.shape_cast %79 : vector<1x256x128xf32> to vector<256x128xf32>
    %cst_75 = arith.constant dense<0.000000e+00> : vector<1x128xf32>
    %81 = tpu.matmul %78, %80, %cst_75 {dimension_numbers = #tpu.dot_dimension_numbers<[1], [0], [0], [1], [0, 0, 1, 1], [], []>} : vector<1x256xf32>, vector<256x128xf32>, vector<1x128xf32> -> vector<1x128xf32>
    %82 = arith.addf %76, %81 : vector<1x128xf32>
    %c0_76 = arith.constant 0 : index
    %c11 = arith.constant 11 : index
    %c0_77 = arith.constant 0 : index
    %83 = vector.load %arg6[%c0_76, %c11, %c0_77] : memref<1x16x256xf32, #tpu.memory_space<vmem>>, vector<1x1x256xf32>
    %84 = vector.shape_cast %83 : vector<1x1x256xf32> to vector<1x256xf32>
    %c11_78 = arith.constant 11 : index
    %c0_79 = arith.constant 0 : index
    %c0_80 = arith.constant 0 : index
    %85 = vector.load %arg3[%c11_78, %c0_79, %c0_80] : memref<16x256x128xf32, #tpu.memory_space<vmem>>, vector<1x256x128xf32>
    %86 = vector.shape_cast %85 : vector<1x256x128xf32> to vector<256x128xf32>
    %cst_81 = arith.constant dense<0.000000e+00> : vector<1x128xf32>
    %87 = tpu.matmul %84, %86, %cst_81 {dimension_numbers = #tpu.dot_dimension_numbers<[1], [0], [0], [1], [0, 0, 1, 1], [], []>} : vector<1x256xf32>, vector<256x128xf32>, vector<1x128xf32> -> vector<1x128xf32>
    %88 = arith.addf %82, %87 : vector<1x128xf32>
    %c0_82 = arith.constant 0 : index
    %c12 = arith.constant 12 : index
    %c0_83 = arith.constant 0 : index
    %89 = vector.load %arg6[%c0_82, %c12, %c0_83] : memref<1x16x256xf32, #tpu.memory_space<vmem>>, vector<1x1x256xf32>
    %90 = vector.shape_cast %89 : vector<1x1x256xf32> to vector<1x256xf32>
    %c12_84 = arith.constant 12 : index
    %c0_85 = arith.constant 0 : index
    %c0_86 = arith.constant 0 : index
    %91 = vector.load %arg3[%c12_84, %c0_85, %c0_86] : memref<16x256x128xf32, #tpu.memory_space<vmem>>, vector<1x256x128xf32>
    %92 = vector.shape_cast %91 : vector<1x256x128xf32> to vector<256x128xf32>
    %cst_87 = arith.constant dense<0.000000e+00> : vector<1x128xf32>
    %93 = tpu.matmul %90, %92, %cst_87 {dimension_numbers = #tpu.dot_dimension_numbers<[1], [0], [0], [1], [0, 0, 1, 1], [], []>} : vector<1x256xf32>, vector<256x128xf32>, vector<1x128xf32> -> vector<1x128xf32>
    %94 = arith.addf %88, %93 : vector<1x128xf32>
    %c0_88 = arith.constant 0 : index
    %c13 = arith.constant 13 : index
    %c0_89 = arith.constant 0 : index
    %95 = vector.load %arg6[%c0_88, %c13, %c0_89] : memref<1x16x256xf32, #tpu.memory_space<vmem>>, vector<1x1x256xf32>
    %96 = vector.shape_cast %95 : vector<1x1x256xf32> to vector<1x256xf32>
    %c13_90 = arith.constant 13 : index
    %c0_91 = arith.constant 0 : index
    %c0_92 = arith.constant 0 : index
    %97 = vector.load %arg3[%c13_90, %c0_91, %c0_92] : memref<16x256x128xf32, #tpu.memory_space<vmem>>, vector<1x256x128xf32>
    %98 = vector.shape_cast %97 : vector<1x256x128xf32> to vector<256x128xf32>
    %cst_93 = arith.constant dense<0.000000e+00> : vector<1x128xf32>
    %99 = tpu.matmul %96, %98, %cst_93 {dimension_numbers = #tpu.dot_dimension_numbers<[1], [0], [0], [1], [0, 0, 1, 1], [], []>} : vector<1x256xf32>, vector<256x128xf32>, vector<1x128xf32> -> vector<1x128xf32>
    %100 = arith.addf %94, %99 : vector<1x128xf32>
    %c0_94 = arith.constant 0 : index
    %c14 = arith.constant 14 : index
    %c0_95 = arith.constant 0 : index
    %101 = vector.load %arg6[%c0_94, %c14, %c0_95] : memref<1x16x256xf32, #tpu.memory_space<vmem>>, vector<1x1x256xf32>
    %102 = vector.shape_cast %101 : vector<1x1x256xf32> to vector<1x256xf32>
    %c14_96 = arith.constant 14 : index
    %c0_97 = arith.constant 0 : index
    %c0_98 = arith.constant 0 : index
    %103 = vector.load %arg3[%c14_96, %c0_97, %c0_98] : memref<16x256x128xf32, #tpu.memory_space<vmem>>, vector<1x256x128xf32>
    %104 = vector.shape_cast %103 : vector<1x256x128xf32> to vector<256x128xf32>
    %cst_99 = arith.constant dense<0.000000e+00> : vector<1x128xf32>
    %105 = tpu.matmul %102, %104, %cst_99 {dimension_numbers = #tpu.dot_dimension_numbers<[1], [0], [0], [1], [0, 0, 1, 1], [], []>} : vector<1x256xf32>, vector<256x128xf32>, vector<1x128xf32> -> vector<1x128xf32>
    %106 = arith.addf %100, %105 : vector<1x128xf32>
    %c0_100 = arith.constant 0 : index
    %c15 = arith.constant 15 : index
    %c0_101 = arith.constant 0 : index
    %107 = vector.load %arg6[%c0_100, %c15, %c0_101] : memref<1x16x256xf32, #tpu.memory_space<vmem>>, vector<1x1x256xf32>
    %108 = vector.shape_cast %107 : vector<1x1x256xf32> to vector<1x256xf32>
    %c15_102 = arith.constant 15 : index
    %c0_103 = arith.constant 0 : index
    %c0_104 = arith.constant 0 : index
    %109 = vector.load %arg3[%c15_102, %c0_103, %c0_104] : memref<16x256x128xf32, #tpu.memory_space<vmem>>, vector<1x256x128xf32>
    %110 = vector.shape_cast %109 : vector<1x256x128xf32> to vector<256x128xf32>
    %cst_105 = arith.constant dense<0.000000e+00> : vector<1x128xf32>
    %111 = tpu.matmul %108, %110, %cst_105 {dimension_numbers = #tpu.dot_dimension_numbers<[1], [0], [0], [1], [0, 0, 1, 1], [], []>} : vector<1x256xf32>, vector<256x128xf32>, vector<1x128xf32> -> vector<1x128xf32>
    %112 = arith.addf %106, %111 : vector<1x128xf32>
    %c0_106 = arith.constant 0 : index
    %c0_107 = arith.constant 0 : index
    %113 = vector.load %arg4[%c0_106, %c0_107] : memref<1x128xf32, #tpu.memory_space<vmem>>, vector<1x128xf32>
    %114 = arith.addf %112, %113 : vector<1x128xf32>
    %c0_108 = arith.constant 0 : index
    %c0_109 = arith.constant 0 : index
    %c0_110 = arith.constant 0 : index
    %115 = vector.load %arg5[%c0_108, %c0_109, %c0_110] : memref<1x1x128xf32, #tpu.memory_space<vmem>>, vector<1x1x128xf32>
    %116 = vector.shape_cast %115 : vector<1x1x128xf32> to vector<1x128xf32>
    %117 = vector.shape_cast %114 : vector<1x128xf32> to vector<1x1x128xf32>
    tpu.vector_store %arg5[%c0_108, %c0_109, %c0_110], %117 {strides = array<i32>} : memref<1x1x128xf32, #tpu.memory_space<vmem>>, vector<1x1x128xf32>,
    return
  }
  func.func @transform_0(%arg0: i32) -> (i32, i32, i32) {
    %c0_i32 = arith.constant 0 : i32
    %c0_i32_0 = arith.constant 0 : i32
    %c0_i32_1 = arith.constant 0 : i32
    return %arg0, %c0_i32, %c0_i32_0 : i32, i32, i32
  }
  func.func @transform_1(%arg0: i32) -> (i32, i32) {
    %c0_i32 = arith.constant 0 : i32
    %c0_i32_0 = arith.constant 0 : i32
    %c0_i32_1 = arith.constant 0 : i32
    return %c0_i32, %c0_i32_0 : i32, i32
  }
  func.func @transform_2(%arg0: i32) -> (i32, i32, i32) {
    %c0_i32 = arith.constant 0 : i32
    %c0_i32_0 = arith.constant 0 : i32
    %c0_i32_1 = arith.constant 0 : i32
    %c0_i32_2 = arith.constant 0 : i32
    return %c0_i32, %c0_i32_0, %c0_i32_1 : i32, i32, i32
  }
  func.func @transform_3(%arg0: i32) -> (i32, i32) {
    %c0_i32 = arith.constant 0 : i32
    %c0_i32_0 = arith.constant 0 : i32
    %c0_i32_1 = arith.constant 0 : i32
    return %c0_i32, %c0_i32_0 : i32, i32
  }
  func.func @transform_4(%arg0: i32) -> (i32, i32, i32) {
    %c0_i32 = arith.constant 0 : i32
    %c0_i32_0 = arith.constant 0 : i32
    %c0_i32_1 = arith.constant 0 : i32
    return %arg0, %c0_i32, %c0_i32_0 : i32, i32, i32
  }
}

</mosaic_0001>

<bundles_post_ra>
// kernel: tile.8
= control target key start
LH: loop header
LB: loop body
LE: loop exit
PB: predicated region body
PF: predicated region fallthrough
CT: control target
= control target key end

     0   :  { %s22_s0 = inlined_call_operand.vmem [shape: f32[16], index: 0, kind: input, shape index: {}]   ;;  %s23_s1 = inlined_call_operand.vmem [shape: f32[4,16], index: 1, kind: output, shape index: {}]  }
   0x1   :  { %v4_v0 = vld [vmem:[%s22_s0] ss:$0 sm:$0xff] }
   0x2   :  { %5 = vst [vmem:[%s23_s1] sm:$0xf] %v4_v0 }

// kernel: simple_convnet_forward.1
= control target key start
LH: loop header
LB: loop body
LE: loop exit
PB: predicated region body
PF: predicated region fallthrough
CT: control target
= control target key end

     0   :  { %9 = vsyncpa [#allocation4], 0  ;;  %s5270_s0 = inlined_call_operand.vmem [shape: f32[2,128,256], index: 0, kind: input, shape index: {}]   ;;  %s5271_s1 = inlined_call_operand.vmem [shape: f32[64,128], index: 1, kind: input, shape index: {}]   ;;  %s5272_s2 = inlined_call_operand.vmem [shape: f32[16,256,128], index: 2, kind: input, shape index: {}]   ;;  %s5273_s3 = inlined_call_operand.vmem [shape: f32[1,128], index: 3, kind: input, shape index: {}]   ;;  %s5274_s4 = inlined_call_operand.hbm [shape: f32[2,1,128], index: 4, kind: output, shape index: {}]  }
   0x1   :  { %11 = vsyncpa [#allocation4 + $0x1], 0  ;;  %s3486_s15 = smov 0   ;;  %s3488_s16 = smov 0  }
   0x2   :  { %s3490_s17 = smov 0   ;;  %s3492_s18 = smov 0  }
   0x3 LB: > { %s3507_s19 = sadd.s32 4294967295, %s3457_s18   ;;  %s2307_s20 = sadd.s32 4294967294, %s3457_s18   ;;  %s3457_s18 = sphi %s3492_s18, %s5280_s18   ;;  %s3453_s17 = sphi %s3490_s17, %s5279_s17   ;;  %s3449_s16 = sphi %s3488_s16, %s5278_s16   ;;  %s3445_s15 = sphi %s3486_s15, %s5277_s15  }
   0x4   : > { %s3511_s21 = sadd.s32 1, %s3457_s18   ;;  %s113_s22 = sadd.s32 1, %s3453_s17 }
   0x5   : > { %s110_s23 = ssub.s32 %s3457_s18, %s3511_s21  ;;  %p123_p0 = scmp.ne.s32.totalorder %s3453_s17, %s3449_s16 }
   0x6   : > { %p111_p1 = scmp.eq.s32.totalorder %s110_s23, 0  ;;  %p124_p2 = scmp.eq.s32.totalorder %s3507_s19, 1 }
   0x7   : > { %p129_p3 = scmp.ne.s32.totalorder %s3449_s16, %s3445_s15  ;;  %p130_p4 = scmp.eq.s32.totalorder %s2307_s20, 1 }
   0x8   : > { %s3522_s24 = scalar_select %p111_p1, %s3453_s17, %s113_s22  }
   0x9   : > { %p3524_p5 = por %p124_p2, %p123_p0  ;;  %p3528_p6 = por %p130_p4, %p129_p3 }
   0xa   : > { %p2310_p7 = scmp.ge.s32.totalorder %s3457_s18, 1  ;;  %p165_p8 = scmp.lt.s32.totalorder %s3457_s18, 3 }
   0xc   : > { %p166_p9 = pnand %p2310_p7, %p165_p8 }
   0xd   : > { %p190_p10 = scmp.lt.s32.totalorder (!%p166_p9), %s3507_s19, 1  ;;  %s188_s9 = sand.u32 (!%p166_p9), 1, %s3449_s16  }
   0xe   : > { %169 = sbr.rel (%p166_p9) target bundleno = 745 (0x2e9), region = 36  ;;  %s2793_s12 = sshll.u32 (!%p166_p9), %s3507_s19, 4 }
   0xf   : > { %s189_s13 = scalar_lea.vmem (!%p166_p9), [#allocation3], %s188_s9  ;;  %s2250_s23 = scalar_lea.hbm (!%p166_p9), %s5274_s4, %s2793_s12 }
  0x10   : > { %s2252_s14 = sshll.u32 (!%p166_p9), %s189_s13, 4  ;;  %s3460_s29 = smov (!%p166_p9), [#allocation3]   ;;  %s2253_s14 = int_to_ptr.vmem [resolvable:$true] %s2252_s14 }
  0x11   : > { %s3401_s30 = sshll.u32 (!%p166_p9), %s3460_s29, 4  ;;  %s3402_s30 = int_to_ptr.vmem [resolvable:$false] %s3401_s30 }
  0x12   : > { %p3404_p0 = scmp.lt.s32.totalorder (!%p166_p9), %s2253_s14, %s3402_s30 }
  0x13   : > { %v3459_v0 = vmov 0.0   ;;  %s191_s27 = scalar_select %p190_p10, %s3507_s19, 1  ;;  %v195_v33 = vld [vmem:[%s5271_s1] sm:$0xff]  ;;  %v196_v34 = vld [vmem:[%s5271_s1 + $0x8] sm:$0xff]  ;;  %v197_v35 = vld [vmem:[%s5271_s1 + $0x10] sm:$0xff] }
  0x14   : > { %299 = vmatprep.mubr.f32.mxu0 %v3459_v0  ;;  %v198_v36 = vld [vmem:[%s5271_s1 + $0x18] sm:$0xff]  ;;  %v199_v37 = vld [vmem:[%s5271_s1 + $0x20] sm:$0xff]  ;;  %v200_v38 = vld [vmem:[%s5271_s1 + $0x28] sm:$0xff]  ;;  %s3403_s19 = scalar_lea.vmem %s3402_s30, 32 }
  0x15   : > { %s2796_s28 = sshll.u32 %s191_s27, 8  ;;  %v201_v39 = vld [vmem:[%s5271_s1 + $0x30] sm:$0xff]  ;;  %v202_v40 = vld [vmem:[%s5271_s1 + $0x38] sm:$0xff]  ;;  %v2342_v49 = vld [vmem:[%s5272_s2 + $0x1e8] sm:$0xff]  ;;  %s2240_s27 = scalar_lea.sflag [#allocation4], %s188_s9 }
  0x16   : > { %s3540_s5 = scalar_lea.vmem %s5270_s0, %s2796_s28  ;;  %v2344_v41 = vld [vmem:[%s5272_s2 + $0x1f8] sm:$0xff]  ;;  %v2343_v45 = vld [vmem:[%s5272_s2 + $0x1f0] sm:$0xff]  ;;  %v398_v50 = vld [vmem:[%s5272_s2 + $0xe8] sm:$0xff]  ;;  %s3397_s28 = scalar_lea.vmem %s2253_s14, 16 }
  0x17   : > { %v234_v1 = vld [vmem:[%s3540_s5 + $0xf8] sm:$0xff]  ;;  %v233_v2 = vld [vmem:[%s3540_s5 + $0xf0] sm:$0xff]  ;;  %v232_v3 = vld [vmem:[%s3540_s5 + $0xe8] sm:$0xff]  ;;  %2797 = vmatprep.subr.mxu1 %v2344_v41  ;;  %p3398_p11 = scmp.ne.s32.totalorder %s2253_s14, %s3397_s28  ;;  %p3405_p1 = scmp.lt.s32.totalorder %s3403_s19, %s3397_s28 }
  0x18   : > { %235 = vmatprep.subr.mxu0 %v234_v1  ;;  %v231_v4 = vld [vmem:[%s3540_s5 + $0xe0] sm:$0xff]  ;;  %v230_v5 = vld [vmem:[%s3540_s5 + $0xd8] sm:$0xff]  ;;  %v229_v6 = vld [vmem:[%s3540_s5 + $0xd0] sm:$0xff] }
  0x19   : > { %236 = vmatpush1.msra.mxu0 %v233_v2  ;;  %v228_v7 = vld [vmem:[%s3540_s5 + $0xc8] sm:$0xff]  ;;  %v227_v8 = vld [vmem:[%s3540_s5 + $0xc0] sm:$0xff]  ;;  %v226_v9 = vld [vmem:[%s3540_s5 + $0xb8] sm:$0xff]  ;;  %p3399_p12 = pnand %p3398_p11, %p3524_p5  ;;  %p3406_p2 = por %p3405_p1, %p3404_p0 }
  0x1a   : > { %237 = vmatprep.subr.mxu0 %v232_v3  ;;  %v225_v10 = vld [vmem:[%s3540_s5 + $0xb0] sm:$0xff]  ;;  %v224_v11 = vld [vmem:[%s3540_s5 + $0xa8] sm:$0xff]  ;;  %v223_v12 = vld [vmem:[%s3540_s5 + $0xa0] sm:$0xff] }
  0x1b   : > { %238 = vmatpush1.msra.mxu0 %v231_v4  ;;  %v222_v13 = vld [vmem:[%s3540_s5 + $0x98] sm:$0xff]  ;;  %v221_v14 = vld [vmem:[%s3540_s5 + $0x90] sm:$0xff]  ;;  %v220_v15 = vld [vmem:[%s3540_s5 + $0x88] sm:$0xff]  ;;  %p3400_p13 = pneg %p3399_p12 }
  0x1c   : > { %239 = vmatprep.subr.mxu0 %v230_v5  ;;  %v219_v16 = vld [vmem:[%s3540_s5 + $0x80] sm:$0xff]  ;;  %v218_v17 = vld [vmem:[%s3540_s5 + $0x78] sm:$0xff]  ;;  %v217_v18 = vld [vmem:[%s3540_s5 + $0x70] sm:$0xff] }
  0x1d   : > { %240 = vmatpush1.msra.mxu0 %v229_v6  ;;  %v216_v19 = vld [vmem:[%s3540_s5 + $0x68] sm:$0xff]  ;;  %v215_v20 = vld [vmem:[%s3540_s5 + $0x60] sm:$0xff]  ;;  %v214_v21 = vld [vmem:[%s3540_s5 + $0x58] sm:$0xff]  ;;  %p3407_p3 = pnand %p3406_p2, %p3400_p13 }
  0x1e   : > { %241 = vmatprep.subr.mxu0 %v228_v7  ;;  %v213_v22 = vld [vmem:[%s3540_s5 + $0x50] sm:$0xff]  ;;  %v212_v23 = vld [vmem:[%s3540_s5 + $0x48] sm:$0xff]  ;;  %v211_v24 = vld [vmem:[%s3540_s5 + $0x40] sm:$0xff] }
  0x1f   : > { %242 = vmatpush1.msra.mxu0 %v227_v8  ;;  %v210_v25 = vld [vmem:[%s3540_s5 + $0x38] sm:$0xff]  ;;  %v209_v26 = vld [vmem:[%s3540_s5 + $0x30] sm:$0xff]  ;;  %v208_v27 = vld [vmem:[%s3540_s5 + $0x28] sm:$0xff] }
  0x20   : > { %243 = vmatprep.subr.mxu0 %v226_v9  ;;  %v207_v28 = vld [vmem:[%s3540_s5 + $0x20] sm:$0xff]  ;;  %v206_v29 = vld [vmem:[%s3540_s5 + $0x18] sm:$0xff]  ;;  %v205_v30 = vld [vmem:[%s3540_s5 + $0x10] sm:$0xff] }
  0x21   : > { %244 = vmatpush1.msra.mxu0 %v225_v10  ;;  %v204_v31 = vld [vmem:[%s3540_s5 + $0x8] sm:$0xff]  ;;  %v203_v32 = vld [vmem:[%s3540_s5] sm:$0xff]  ;;  %v400_v42 = vld [vmem:[%s5272_s2 + $0xf8] sm:$0xff] }
  0x22   : > { %245 = vmatprep.subr.mxu0 %v224_v11  ;;  %v2328_v43 = vld [vmem:[%s5272_s2 + $0x178] sm:$0xff]  ;;  %v399_v46 = vld [vmem:[%s5272_s2 + $0xf0] sm:$0xff]  ;;  %v2326_v51 = vld [vmem:[%s5272_s2 + $0x168] sm:$0xff] }
  0x23   : > { %246 = vmatpush1.msra.mxu0 %v223_v12  ;;  %v384_v44 = vld [vmem:[%s5272_s2 + $0x78] sm:$0xff]  ;;  %2798 = vmatpush3.msra.mxu1 %v2328_v43  ;;  %v2327_v47 = vld [vmem:[%s5272_s2 + $0x170] sm:$0xff]  ;;  %v382_v52 = vld [vmem:[%s5272_s2 + $0x68] sm:$0xff] }
  0x24   : > { %247 = vmatprep.subr.mxu0 %v222_v13  ;;  %2799 = vmatprep.subr.mxu1 %v2343_v45  ;;  %v383_v48 = vld [vmem:[%s5272_s2 + $0x70] sm:$0xff]  ;;  %v2341_v53 = vld [vmem:[%s5272_s2 + $0x1e0] sm:$0xff]  ;;  %v2340_v57 = vld [vmem:[%s5272_s2 + $0x1d8] sm:$0xff] }
  0x25   : > { %248 = vmatpush1.msra.mxu0 %v221_v14  ;;  %2800 = vmatpush3.msra.mxu1 %v2327_v47  ;;  %v397_v54 = vld [vmem:[%s5272_s2 + $0xe0] sm:$0xff]  ;;  %v396_v58 = vld [vmem:[%s5272_s2 + $0xd8] sm:$0xff]  ;;  %v2339_v61 = vld [vmem:[%s5272_s2 + $0x1d0] sm:$0xff] }
  0x26   : > { %249 = vmatprep.subr.mxu0 %v220_v15  ;;  %2801 = vmatprep.subr.mxu1 %v2342_v49  ;;  %v2325_v55 = vld [vmem:[%s5272_s2 + $0x160] sm:$0xff]  ;;  %v2324_v59 = vld [vmem:[%s5272_s2 + $0x158] sm:$0xff]  ;;  %v395_v62 = vld [vmem:[%s5272_s2 + $0xd0] sm:$0xff] }
  0x27   : > { %250 = vmatpush1.msra.mxu0 %v219_v16  ;;  %2802 = vmatpush3.msra.mxu1 %v2326_v51  ;;  %v381_v56 = vld [vmem:[%s5272_s2 + $0x60] sm:$0xff]  ;;  %v380_v60 = vld [vmem:[%s5272_s2 + $0x58] sm:$0xff]  ;;  %v2323_v63 = vld [vmem:[%s5272_s2 + $0x150] sm:$0xff] }
  0x28   : > { %251 = vmatprep.subr.mxu0 %v218_v17  ;;  %2803 = vmatprep.subr.mxu1 %v2341_v53  ;;  %v2338_v1 = vld [vmem:[%s5272_s2 + $0x1c8] sm:$0xff]  ;;  %v2337_v5 = vld [vmem:[%s5272_s2 + $0x1c0] sm:$0xff]  ;;  %v2336_v9 = vld [vmem:[%s5272_s2 + $0x1b8] sm:$0xff] }
  0x29   : > { %252 = vmatpush1.msra.mxu0 %v217_v18  ;;  %2804 = vmatpush3.msra.mxu1 %v2325_v55  ;;  %v394_v2 = vld [vmem:[%s5272_s2 + $0xc8] sm:$0xff]  ;;  %v393_v6 = vld [vmem:[%s5272_s2 + $0xc0] sm:$0xff]  ;;  %v392_v10 = vld [vmem:[%s5272_s2 + $0xb8] sm:$0xff] }
  0x2a   : > { %253 = vmatprep.subr.mxu0 %v216_v19  ;;  %2805 = vmatprep.subr.mxu1 %v2340_v57  ;;  %v2322_v3 = vld [vmem:[%s5272_s2 + $0x148] sm:$0xff]  ;;  %v2321_v7 = vld [vmem:[%s5272_s2 + $0x140] sm:$0xff]  ;;  %v2320_v11 = vld [vmem:[%s5272_s2 + $0x138] sm:$0xff] }
  0x2b   : > { %254 = vmatpush1.msra.mxu0 %v215_v20  ;;  %2806 = vmatpush3.msra.mxu1 %v2324_v59  ;;  %v378_v4 = vld [vmem:[%s5272_s2 + $0x48] sm:$0xff]  ;;  %v377_v8 = vld [vmem:[%s5272_s2 + $0x40] sm:$0xff]  ;;  %v376_v12 = vld [vmem:[%s5272_s2 + $0x38] sm:$0xff] }
  0x2c   : > { %255 = vmatprep.subr.mxu0 %v214_v21  ;;  %2807 = vmatprep.subr.mxu1 %v2339_v61  ;;  %v2335_v13 = vld [vmem:[%s5272_s2 + $0x1b0] sm:$0xff]  ;;  %v2334_v17 = vld [vmem:[%s5272_s2 + $0x1a8] sm:$0xff]  ;;  %v2333_v21 = vld [vmem:[%s5272_s2 + $0x1a0] sm:$0xff] }
  0x2d   : > { %256 = vmatpush1.msra.mxu0 %v213_v22  ;;  %2808 = vmatpush3.msra.mxu1 %v2323_v63  ;;  %v391_v14 = vld [vmem:[%s5272_s2 + $0xb0] sm:$0xff]  ;;  %v390_v18 = vld [vmem:[%s5272_s2 + $0xa8] sm:$0xff]  ;;  %v389_v22 = vld [vmem:[%s5272_s2 + $0xa0] sm:$0xff]  ;;  %v437_v63 = vlaneseq }
  0x2e   : > { %257 = vmatprep.subr.mxu0 %v212_v23  ;;  %2809 = vmatprep.subr.mxu1 %v2338_v1  ;;  %v2319_v15 = vld [vmem:[%s5272_s2 + $0x130] sm:$0xff]  ;;  %v2318_v19 = vld [vmem:[%s5272_s2 + $0x128] sm:$0xff]  ;;  %v2317_v23 = vld [vmem:[%s5272_s2 + $0x120] sm:$0xff] }
  0x2f   : > { %258 = vmatpush1.msra.mxu0 %v211_v24  ;;  %2810 = vmatpush3.msra.mxu1 %v2322_v3  ;;  %v375_v16 = vld [vmem:[%s5272_s2 + $0x30] sm:$0xff]  ;;  %v374_v20 = vld [vmem:[%s5272_s2 + $0x28] sm:$0xff]  ;;  %v373_v24 = vld [vmem:[%s5272_s2 + $0x20] sm:$0xff] }
  0x30   : > { %259 = vmatprep.subr.mxu0 %v210_v25  ;;  %2811 = vmatprep.subr.mxu1 %v2337_v5  ;;  %v2332_v25 = vld [vmem:[%s5272_s2 + $0x198] sm:$0xff] }
  0x31   : > { %260 = vmatpush1.msra.mxu0 %v209_v26  ;;  %2812 = vmatpush3.msra.mxu1 %v2321_v7  ;;  %v388_v26 = vld [vmem:[%s5272_s2 + $0x98] sm:$0xff] }
  0x32   : > { %261 = vmatprep.subr.mxu0 %v208_v27  ;;  %2813 = vmatprep.subr.mxu1 %v2336_v9  ;;  %v2316_v27 = vld [vmem:[%s5272_s2 + $0x118] sm:$0xff] }
  0x33   : > { %262 = vmatpush1.msra.mxu0 %v207_v28  ;;  %2814 = vmatpush3.msra.mxu1 %v2320_v11  ;;  %v372_v28 = vld [vmem:[%s5272_s2 + $0x18] sm:$0xff]  ;;  %v438_v11 = vshrl.u32 %v437_v63, 7  ;;  %v2366_v63 = vld [vmem:[%s5272_s2 + $0x2a8] sm:$0xff] }
  0x34   : > { %263 = vmatprep.subr.mxu0 %v206_v29  ;;  %2815 = vmatprep.subr.mxu1 %v2335_v13  ;;  %v2331_v29 = vld [vmem:[%s5272_s2 + $0x190] sm:$0xff]  ;;  %v2376_v41 = vld [vmem:[%s5272_s2 + $0x2f8] sm:$0xff] }
  0x35   : > { %264 = vmatpush1.msra.mxu0 %v205_v30  ;;  %2816 = vmatpush3.msra.mxu1 %v2319_v15  ;;  %v387_v30 = vld [vmem:[%s5272_s2 + $0x90] sm:$0xff]  ;;  %v3803_v13 = vsub.s32 0, %v438_v11 }
  0x36   : > { %265 = vmatprep.subr.mxu0 %v204_v31  ;;  %2817 = vmatprep.subr.mxu1 %v2334_v17  ;;  %v2315_v31 = vld [vmem:[%s5272_s2 + $0x110] sm:$0xff] }
  0x37   : > { %266 = vmatpush1.msra.mxu0 %v203_v32  ;;  %2818 = vmatpush3.msra.mxu1 %v2318_v19  ;;  %v371_v32 = vld [vmem:[%s5272_s2 + $0x10] sm:$0xff] }
  0x38   : > { %300 = vmatmul.mubr.f32.vlgmr.msra.gmra.mxu0 %v195_v33  ;;  %2832 = vmatprep.subr.mxu0 %v400_v42  ;;  %v2330_v33 = vld [vmem:[%s5272_s2 + $0x188] sm:$0xff]  ;;  %v2408_v42 = vld [vmem:[%s5272_s2 + $0x3f8] sm:$0xff] }
  0x39   : > { %305 = vmatprep.mubr.f32.mxu0 %v3459_v0  ;;  %2833 = vmatpush3.msra.mxu0 %v384_v44 }
  0x3a   : > { %2834 = vmatprep.subr.mxu0 %v399_v46  ;;  %2819 = vmatprep.subr.mxu1 %v2333_v21 }
  0x3b   : > { %2835 = vmatpush3.msra.mxu0 %v383_v48  ;;  %2820 = vmatpush3.msra.mxu1 %v2317_v23  ;;  %v2392_v23 = vld [vmem:[%s5272_s2 + $0x378] sm:$0xff] }
  0x3c   : > { %306 = vmatmul.mubr.f32.gmra.mxu0 %v196_v34  ;;  %2836 = vmatprep.subr.mxu0 %v398_v50  ;;  %v386_v34 = vld [vmem:[%s5272_s2 + $0x88] sm:$0xff] }
  0x3d   : > { %311 = vmatprep.mubr.f32.mxu0 %v3459_v0  ;;  %2837 = vmatpush3.msra.mxu0 %v382_v52 }
  0x3e   : > { %2838 = vmatprep.subr.mxu0 %v397_v54  ;;  %2821 = vmatprep.subr.mxu1 %v2332_v25  ;;  %v2375_v25 = vld [vmem:[%s5272_s2 + $0x2f0] sm:$0xff] }
  0x3f   : > { %2839 = vmatpush3.msra.mxu0 %v381_v56  ;;  %2822 = vmatpush3.msra.mxu1 %v2316_v27  ;;  %v2407_v27 = vld [vmem:[%s5272_s2 + $0x3f0] sm:$0xff] }
  0x40   : > { %312 = vmatmul.mubr.f32.gmra.mxu0 %v197_v35  ;;  %2840 = vmatprep.subr.mxu0 %v396_v58  ;;  %v2314_v35 = vld [vmem:[%s5272_s2 + $0x108] sm:$0xff] }
  0x41   : > { %317 = vmatprep.mubr.f32.mxu0 %v3459_v0  ;;  %2841 = vmatpush3.msra.mxu0 %v380_v60 }
  0x42   : > { %2842 = vmatprep.subr.mxu0 %v395_v62  ;;  %2823 = vmatprep.subr.mxu1 %v2331_v29  ;;  %v2359_v29 = vld [vmem:[%s5272_s2 + $0x270] sm:$0xff] }
  0x43   : > { %2824 = vmatpush3.msra.mxu1 %v2315_v31  ;;  %v2374_v31 = vld [vmem:[%s5272_s2 + $0x2e8] sm:$0xff] }
  0x44   : > { %318 = vmatmul.mubr.f32.gmra.mxu0 %v198_v36  ;;  %v370_v36 = vld [vmem:[%s5272_s2 + $0x8] sm:$0xff]  ;;  %2825 = vmatprep.subr.mxu1 %v2330_v33 }
  0x45   : > { %323 = vmatprep.mubr.f32.mxu0 %v3459_v0  ;;  %2826 = vmatpush3.msra.mxu1 %v2314_v35  ;;  %v2358_v33 = vld [vmem:[%s5272_s2 + $0x268] sm:$0xff]  ;;  %v2373_v35 = vld [vmem:[%s5272_s2 + $0x2e0] sm:$0xff] }
  0x48   : > { %324 = vmatmul.mubr.f32.gmra.mxu0 %v199_v37  ;;  %v2329_v37 = vld [vmem:[%s5272_s2 + $0x180] sm:$0xff] }
  0x49   : > { %329 = vmatprep.mubr.f32.mxu0 %v3459_v0  ;;  %2827 = vmatprep.subr.mxu1 %v2329_v37  ;;  %v2357_v37 = vld [vmem:[%s5272_s2 + $0x260] sm:$0xff] }
  0x4c   : > { %330 = vmatmul.mubr.f32.gmra.mxu0 %v200_v38  ;;  %v385_v38 = vld [vmem:[%s5272_s2 + $0x80] sm:$0xff] }
  0x4d   : > { %335 = vmatprep.mubr.f32.mxu0 %v3459_v0 }
  0x50   : > { %336 = vmatmul.mubr.f32.gmra.mxu0 %v201_v39  ;;  %v2313_v39 = vld [vmem:[%s5272_s2 + $0x100] sm:$0xff] }
  0x51   : > { %341 = vmatprep.mubr.f32.mxu0 %v3459_v0  ;;  %v379_v0 = vld [vmem:[%s5272_s2 + $0x50] sm:$0xff]  ;;  %2828 = vmatpush3.msra.mxu1 %v2313_v39  ;;  %v2372_v39 = vld [vmem:[%s5272_s2 + $0x2d8] sm:$0xff] }
  0x52   : > { %2843 = vmatpush3.msra.mxu0 %v379_v0  ;;  %2867 = vmatprep.subr.mxu1 %v2376_v41  ;;  %v2356_v41 = vld [vmem:[%s5272_s2 + $0x258] sm:$0xff] }
  0x53   : > { %2844 = vmatprep.subr.mxu0 %v394_v2 }
  0x54   : > { %342 = vmatmul.mubr.f32.gmra.mxu0 %v202_v40  ;;  %v369_v40 = vld [vmem:[%s5272_s2] sm:$0xff] }
  0x55   : > { %2845 = vmatpush3.msra.mxu0 %v378_v4 }
  0x56   : > { %2846 = vmatprep.subr.mxu0 %v393_v6 }
  0x57   : > { %2847 = vmatpush3.msra.mxu0 %v377_v8 }
  0x58   : > { %2848 = vmatprep.subr.mxu0 %v392_v10 }
  0x59   : > { %2849 = vmatpush3.msra.mxu0 %v376_v12 }
  0x5a   : > { %2850 = vmatprep.subr.mxu0 %v391_v14  ;;  %v3805_v14 = vsub.s32 1, %v438_v11  ;;  %v2363_v11 = vld [vmem:[%s5272_s2 + $0x290] sm:$0xff] }
  0x5b   : > { %2851 = vmatpush3.msra.mxu0 %v375_v16 }
  0x5c   : > { %2852 = vmatprep.subr.mxu0 %v390_v18 }
  0x5d   : > { %2853 = vmatpush3.msra.mxu0 %v374_v20 }
  0x5e   : > { %2854 = vmatprep.subr.mxu0 %v389_v22  ;;  %v2360_v22 = vld [vmem:[%s5272_s2 + $0x278] sm:$0xff] }
  0x5f   : > { %2855 = vmatpush3.msra.mxu0 %v373_v24 }
  0x60   : > { %2856 = vmatprep.subr.mxu0 %v388_v26 }
  0x61   : > { %2857 = vmatpush3.msra.mxu0 %v372_v28 }
  0x62   : > { %2858 = vmatprep.subr.mxu0 %v387_v30  ;;  %v2391_v30 = vld [vmem:[%s5272_s2 + $0x370] sm:$0xff] }
  0x63   : > { %2859 = vmatpush3.msra.mxu0 %v371_v32  ;;  %v2406_v32 = vld [vmem:[%s5272_s2 + $0x3e8] sm:$0xff] }
  0x64   : > { %2860 = vmatprep.subr.mxu0 %v386_v34  ;;  %v2390_v34 = vld [vmem:[%s5272_s2 + $0x368] sm:$0xff] }
  0x65   : > { %2861 = vmatpush3.msra.mxu0 %v370_v36  ;;  %v2405_v36 = vld [vmem:[%s5272_s2 + $0x3e0] sm:$0xff] }
  0x66   : > { %2862 = vmatprep.subr.mxu0 %v385_v38  ;;  %v2389_v38 = vld [vmem:[%s5272_s2 + $0x360] sm:$0xff] }
  0x67   : > { %2863 = vmatpush3.msra.mxu0 %v369_v40  ;;  %v2404_v40 = vld [vmem:[%s5272_s2 + $0x3d8] sm:$0xff] }
  0x68   : > { %2902 = vmatprep.subr.mxu0 %v2408_v42  ;;  %v2388_v42 = vld [vmem:[%s5272_s2 + $0x358] sm:$0xff] }
  0xf8   : > { %v301_v43 = vpop.f32.mrf.mxu0 }
  0xfa   : > { %v303_v44 = vpop.f32.mrf.mxu0 }
  0xfc   : > { %v307_v45 = vpop.f32.mrf.mxu0 }
  0xfe   : > { %v309_v46 = vpop.f32.mrf.mxu0 }
 0x100   : > { %v313_v47 = vpop.f32.mrf.mxu0 }
 0x101   : > { %v348_v56 = vmax.f32 %v301_v43, %v313_v47  ;;  %v2371_v43 = vld [vmem:[%s5272_s2 + $0x2d0] sm:$0xff]  ;;  %v2370_v47 = vld [vmem:[%s5272_s2 + $0x2c8] sm:$0xff] }
 0x102   : > { %v315_v48 = vpop.f32.mrf.mxu0 }
 0x103   : > { %v349_v59 = vmax.f32 %v303_v44, %v315_v48  ;;  %v2403_v44 = vld [vmem:[%s5272_s2 + $0x3d0] sm:$0xff]  ;;  %v2402_v48 = vld [vmem:[%s5272_s2 + $0x3c8] sm:$0xff] }
 0x104   : > { %v319_v49 = vpop.f32.mrf.mxu0 }
 0x105   : > { %v350_v0 = vmax.f32 %v307_v45, %v319_v49  ;;  %v2355_v45 = vld [vmem:[%s5272_s2 + $0x250] sm:$0xff]  ;;  %v2354_v49 = vld [vmem:[%s5272_s2 + $0x248] sm:$0xff] }
 0x106   : > { %v321_v50 = vpop.f32.mrf.mxu0 }
 0x107   : > { %v351_v5 = vmax.f32 %v309_v46, %v321_v50  ;;  %v2387_v46 = vld [vmem:[%s5272_s2 + $0x350] sm:$0xff]  ;;  %v2386_v50 = vld [vmem:[%s5272_s2 + $0x348] sm:$0xff] }
 0x108   : > { %v325_v51 = vpop.f32.mrf.mxu0 }
 0x10a   : > { %v327_v52 = vpop.f32.mrf.mxu0 }
 0x10c   : > { %v331_v53 = vpop.f32.mrf.mxu0 }
 0x10e   : > { %v333_v54 = vpop.f32.mrf.mxu0 }
 0x110   : > { %v337_v55 = vpop.f32.mrf.mxu0 }
 0x111   : > { %v352_v57 = vmax.f32 %v325_v51, %v337_v55  ;;  %v2369_v51 = vld [vmem:[%s5272_s2 + $0x2c0] sm:$0xff]  ;;  %v2368_v55 = vld [vmem:[%s5272_s2 + $0x2b8] sm:$0xff] }
 0x112   : > { %v339_v58 = vpop.f32.mrf.mxu0 }
 0x113   : > { %v356_v60 = vmax.f32 %v348_v56, %v352_v57  ;;  %v353_v61 = vmax.f32 %v327_v52, %v339_v58  ;;  %v2401_v52 = vld [vmem:[%s5272_s2 + $0x3c0] sm:$0xff]  ;;  %v2400_v56 = vld [vmem:[%s5272_s2 + $0x3b8] sm:$0xff] }
 0x114   : > { %v343_v62 = vpop.f32.mrf.mxu0  ;;  %v2352_v57 = vld [vmem:[%s5272_s2 + $0x238] sm:$0xff] }
 0x115   : > { %v360_v1 = vmax.f32 %v356_v60, 0.0  ;;  %v357_v2 = vmax.f32 %v349_v59, %v353_v61  ;;  %v354_v3 = vmax.f32 %v331_v53, %v343_v62  ;;  %v2353_v53 = vld [vmem:[%s5272_s2 + $0x240] sm:$0xff]  ;;  %v2384_v58 = vld [vmem:[%s5272_s2 + $0x338] sm:$0xff]  ;;  %v2367_v59 = vld [vmem:[%s5272_s2 + $0x2b0] sm:$0xff] }
 0x116   : > { %v345_v4 = vpop.f32.mrf.mxu0  ;;  %v2399_v60 = vld [vmem:[%s5272_s2 + $0x3b0] sm:$0xff] }
 0x117   : > { %364 = vst [vmem:[#allocation2] sm:$0xff] %v360_v1  ;;  %v361_v6 = vmax.f32 %v357_v2, 0.0  ;;  %v358_v7 = vmax.f32 %v350_v0, %v354_v3  ;;  %v355_v8 = vmax.f32 %v333_v54, %v345_v4  ;;  %v2385_v54 = vld [vmem:[%s5272_s2 + $0x340] sm:$0xff]  ;;  %v2351_v61 = vld [vmem:[%s5272_s2 + $0x230] sm:$0xff]  ;;  %v2398_v0 = vld [vmem:[%s5272_s2 + $0x3a8] sm:$0xff] }
 0x118   : > { %v2383_v62 = vld [vmem:[%s5272_s2 + $0x330] sm:$0xff]  ;;  %v2350_v1 = vld [vmem:[%s5272_s2 + $0x228] sm:$0xff]  ;;  %v2365_v3 = vld [vmem:[%s5272_s2 + $0x2a0] sm:$0xff] }
 0x119   : > { %365 = vst [vmem:[#allocation2 + $0x8] sm:$0xff] %v361_v6  ;;  %v362_v9 = vmax.f32 %v358_v7, 0.0  ;;  %v359_v10 = vmax.f32 %v351_v5, %v355_v8  ;;  %v2382_v2 = vld [vmem:[%s5272_s2 + $0x328] sm:$0xff]  ;;  %v2397_v4 = vld [vmem:[%s5272_s2 + $0x3a0] sm:$0xff]  ;;  %v2364_v7 = vld [vmem:[%s5272_s2 + $0x298] sm:$0xff] }
 0x11a   : > { %v2349_v5 = vld [vmem:[%s5272_s2 + $0x220] sm:$0xff]  ;;  %v2396_v8 = vld [vmem:[%s5272_s2 + $0x398] sm:$0xff] }
 0x11b   : > { %366 = vst [vmem:[#allocation2 + $0x10] sm:$0xff] %v362_v9  ;;  %v363_v12 = vmax.f32 %v359_v10, 0.0  ;;  %v2381_v6 = vld [vmem:[%s5272_s2 + $0x320] sm:$0xff]  ;;  %v2348_v9 = vld [vmem:[%s5272_s2 + $0x218] sm:$0xff] }
 0x11c   : > { %v2380_v10 = vld [vmem:[%s5272_s2 + $0x318] sm:$0xff] }
 0x11d   : > { %367 = vst [vmem:[#allocation2 + $0x18] sm:$0xff] %v363_v12  ;;  %v2395_v12 = vld [vmem:[%s5272_s2 + $0x390] sm:$0xff] }
 0x120   : > { %v402_v15 = vld [vmem:[#allocation2 + $0x1] ss:$8 sm:$0x3]  ;;  %v368_v16 = vld [vmem:[#allocation2] ss:$8 sm:$0x3] }
 0x121   : > { %v440_v17 = vrot.slane %v402_v15, %v3803_v13  ;;  %v444_v18 = vrot.slane %v402_v15, %v3805_v14  ;;  %v521_v19 = vrot.slane %v368_v16, %v3803_v13  ;;  %v525_v20 = vrot.slane %v368_v16, %v3805_v14  ;;  %v3811_v21 = vld [vmem:[#allocation2 + $0x2] ss:$8 sm:$0x3]  ;;  %v3819_v24 = vld [vmem:[#allocation2 + $0x3] ss:$8 sm:$0x3] }
 0x122   : > { %v641_v26 = vrot.slane %v3811_v21, %v3805_v14  ;;  %v758_v28 = vrot.slane %v3819_v24, %v3805_v14  ;;  %v2347_v15 = vld [vmem:[%s5272_s2 + $0x210] sm:$0xff] }
 0x123   : > { %511 = vmatprep.mubr.f32.mxu1 %v444_v18  ;;  %592 = vmatprep.mubr.f32.mxu0 %v525_v20  ;;  %v2379_v16 = vld [vmem:[%s5272_s2 + $0x310] sm:$0xff]  ;;  %v2394_v18 = vld [vmem:[%s5272_s2 + $0x388] sm:$0xff] }
 0x124   : > { %512 = vmatmul.mubr.f32.vlgmr.msra.gmra.mxu1 %v440_v17  ;;  %593 = vmatmul.mubr.f32.vlgmr.msra.gmra.mxu0 %v521_v19  ;;  %v2362_v17 = vld [vmem:[%s5272_s2 + $0x288] sm:$0xff] }
 0x125   : > { %2868 = vmatpush3.msra.mxu1 %v2360_v22  ;;  %2903 = vmatpush3.msra.mxu0 %v2392_v23  ;;  %v2346_v19 = vld [vmem:[%s5272_s2 + $0x208] sm:$0xff]  ;;  %v2361_v22 = vld [vmem:[%s5272_s2 + $0x280] sm:$0xff] }
 0x126   : > { %2869 = vmatprep.subr.mxu1 %v2375_v25  ;;  %708 = vmatprep.mubr.f32.mxu1 %v641_v26  ;;  %v2378_v20 = vld [vmem:[%s5272_s2 + $0x308] sm:$0xff]  ;;  %v2393_v23 = vld [vmem:[%s5272_s2 + $0x380] sm:$0xff] }
 0x127   : > { %2904 = vmatprep.subr.mxu0 %v2407_v27  ;;  %825 = vmatprep.mubr.f32.mxu0 %v758_v28  ;;  %v2345_v25 = vld [vmem:[%s5272_s2 + $0x200] sm:$0xff]  ;;  %v637_v28 = vrot.slane %v3811_v21, %v3803_v13  ;;  %v2424_v21 = vld [vmem:[%s5272_s2 + $0x478] sm:$0xff] }
 0x128   : > { %2870 = vmatpush3.msra.mxu1 %v2359_v29  ;;  %2905 = vmatpush3.msra.mxu0 %v2391_v30  ;;  %v2377_v26 = vld [vmem:[%s5272_s2 + $0x300] sm:$0xff]  ;;  %v754_v29 = vrot.slane %v3819_v24, %v3803_v13  ;;  %v2440_v30 = vld [vmem:[%s5272_s2 + $0x4f8] sm:$0xff] }
 0x129   : > { %2871 = vmatprep.subr.mxu1 %v2374_v31  ;;  %2906 = vmatprep.subr.mxu0 %v2406_v32  ;;  %v4005_v27 = vld [vmem:[#allocation2 + $0x4] ss:$8 sm:$0x3]  ;;  %v2472_v31 = vld [vmem:[%s5272_s2 + $0x5f8] sm:$0xff] }
 0x12a   : > { %2872 = vmatpush3.msra.mxu1 %v2358_v33  ;;  %2907 = vmatpush3.msra.mxu0 %v2390_v34  ;;  %v4017_v32 = vld [vmem:[#allocation2 + $0x5] ss:$8 sm:$0x3]  ;;  %v875_v24 = vrot.slane %v4005_v27, %v3805_v14  ;;  %v2456_v33 = vld [vmem:[%s5272_s2 + $0x578] sm:$0xff] }
 0x12b   : > { %2873 = vmatprep.subr.mxu1 %v2373_v35  ;;  %2908 = vmatprep.subr.mxu0 %v2405_v36  ;;  %v992_v34 = vrot.slane %v4017_v32, %v3805_v14  ;;  %v2439_v35 = vld [vmem:[%s5272_s2 + $0x4f0] sm:$0xff] }
 0x12c   : > { %2874 = vmatpush3.msra.mxu1 %v2357_v37  ;;  %2909 = vmatpush3.msra.mxu0 %v2389_v38  ;;  %v2471_v36 = vld [vmem:[%s5272_s2 + $0x5f0] sm:$0xff] }
 0x12d   : > { %2875 = vmatprep.subr.mxu1 %v2372_v39  ;;  %2910 = vmatprep.subr.mxu0 %v2404_v40  ;;  %v2423_v37 = vld [vmem:[%s5272_s2 + $0x470] sm:$0xff]  ;;  %v2438_v39 = vld [vmem:[%s5272_s2 + $0x4e8] sm:$0xff] }
 0x12e   : > { %2876 = vmatpush3.msra.mxu1 %v2356_v41  ;;  %2911 = vmatpush3.msra.mxu0 %v2388_v42  ;;  %v2455_v38 = vld [vmem:[%s5272_s2 + $0x570] sm:$0xff]  ;;  %v2470_v40 = vld [vmem:[%s5272_s2 + $0x5e8] sm:$0xff] }
 0x12f   : > { %2877 = vmatprep.subr.mxu1 %v2371_v43  ;;  %2912 = vmatprep.subr.mxu0 %v2403_v44  ;;  %v2422_v41 = vld [vmem:[%s5272_s2 + $0x468] sm:$0xff]  ;;  %v2437_v43 = vld [vmem:[%s5272_s2 + $0x4e0] sm:$0xff] }
 0x130   : > { %2878 = vmatpush3.msra.mxu1 %v2355_v45  ;;  %2913 = vmatpush3.msra.mxu0 %v2387_v46  ;;  %v2454_v42 = vld [vmem:[%s5272_s2 + $0x568] sm:$0xff]  ;;  %v2469_v44 = vld [vmem:[%s5272_s2 + $0x5e0] sm:$0xff] }
 0x131   : > { %2879 = vmatprep.subr.mxu1 %v2370_v47  ;;  %2914 = vmatprep.subr.mxu0 %v2402_v48  ;;  %v2421_v45 = vld [vmem:[%s5272_s2 + $0x460] sm:$0xff]  ;;  %v2436_v47 = vld [vmem:[%s5272_s2 + $0x4d8] sm:$0xff] }
 0x132   : > { %2880 = vmatpush3.msra.mxu1 %v2354_v49  ;;  %2915 = vmatpush3.msra.mxu0 %v2386_v50  ;;  %v2453_v46 = vld [vmem:[%s5272_s2 + $0x560] sm:$0xff]  ;;  %v2468_v48 = vld [vmem:[%s5272_s2 + $0x5d8] sm:$0xff] }
 0x133   : > { %2881 = vmatprep.subr.mxu1 %v2369_v51  ;;  %2916 = vmatprep.subr.mxu0 %v2401_v52  ;;  %v2420_v49 = vld [vmem:[%s5272_s2 + $0x458] sm:$0xff]  ;;  %v2435_v51 = vld [vmem:[%s5272_s2 + $0x4d0] sm:$0xff] }
 0x134   : > { %2882 = vmatpush3.msra.mxu1 %v2353_v53  ;;  %2917 = vmatpush3.msra.mxu0 %v2385_v54  ;;  %v2452_v50 = vld [vmem:[%s5272_s2 + $0x558] sm:$0xff]  ;;  %v2467_v52 = vld [vmem:[%s5272_s2 + $0x5d0] sm:$0xff] }
 0x135   : > { %2883 = vmatprep.subr.mxu1 %v2368_v55  ;;  %2918 = vmatprep.subr.mxu0 %v2400_v56  ;;  %v2419_v53 = vld [vmem:[%s5272_s2 + $0x450] sm:$0xff]  ;;  %v2434_v55 = vld [vmem:[%s5272_s2 + $0x4c8] sm:$0xff] }
 0x136   : > { %2884 = vmatpush3.msra.mxu1 %v2352_v57  ;;  %2919 = vmatpush3.msra.mxu0 %v2384_v58  ;;  %v2451_v54 = vld [vmem:[%s5272_s2 + $0x550] sm:$0xff]  ;;  %v2466_v56 = vld [vmem:[%s5272_s2 + $0x5c8] sm:$0xff] }
 0x137   : > { %2885 = vmatprep.subr.mxu1 %v2367_v59  ;;  %2920 = vmatprep.subr.mxu0 %v2399_v60  ;;  %v2418_v57 = vld [vmem:[%s5272_s2 + $0x448] sm:$0xff]  ;;  %v2433_v59 = vld [vmem:[%s5272_s2 + $0x4c0] sm:$0xff] }
 0x138   : > { %2886 = vmatpush3.msra.mxu1 %v2351_v61  ;;  %2921 = vmatpush3.msra.mxu0 %v2383_v62  ;;  %v2450_v58 = vld [vmem:[%s5272_s2 + $0x548] sm:$0xff]  ;;  %v2465_v60 = vld [vmem:[%s5272_s2 + $0x5c0] sm:$0xff] }
 0x139   : > { %2887 = vmatprep.subr.mxu1 %v2366_v63  ;;  %2922 = vmatprep.subr.mxu0 %v2398_v0  ;;  %v2417_v61 = vld [vmem:[%s5272_s2 + $0x440] sm:$0xff]  ;;  %v2432_v63 = vld [vmem:[%s5272_s2 + $0x4b8] sm:$0xff] }
 0x13a   : > { %2888 = vmatpush3.msra.mxu1 %v2350_v1  ;;  %2923 = vmatpush3.msra.mxu0 %v2382_v2  ;;  %v2449_v62 = vld [vmem:[%s5272_s2 + $0x540] sm:$0xff]  ;;  %v2464_v0 = vld [vmem:[%s5272_s2 + $0x5b8] sm:$0xff] }
 0x13b   : > { %2889 = vmatprep.subr.mxu1 %v2365_v3  ;;  %2924 = vmatprep.subr.mxu0 %v2397_v4  ;;  %v2416_v1 = vld [vmem:[%s5272_s2 + $0x438] sm:$0xff]  ;;  %v2431_v3 = vld [vmem:[%s5272_s2 + $0x4b0] sm:$0xff] }
 0x13c   : > { %2890 = vmatpush3.msra.mxu1 %v2349_v5  ;;  %2925 = vmatpush3.msra.mxu0 %v2381_v6  ;;  %v2448_v2 = vld [vmem:[%s5272_s2 + $0x538] sm:$0xff]  ;;  %v2463_v4 = vld [vmem:[%s5272_s2 + $0x5b0] sm:$0xff] }
 0x13d   : > { %2891 = vmatprep.subr.mxu1 %v2364_v7  ;;  %2926 = vmatprep.subr.mxu0 %v2396_v8  ;;  %v2415_v5 = vld [vmem:[%s5272_s2 + $0x430] sm:$0xff]  ;;  %v2430_v7 = vld [vmem:[%s5272_s2 + $0x4a8] sm:$0xff] }
 0x13e   : > { %2892 = vmatpush3.msra.mxu1 %v2348_v9  ;;  %2927 = vmatpush3.msra.mxu0 %v2380_v10  ;;  %v2447_v6 = vld [vmem:[%s5272_s2 + $0x530] sm:$0xff]  ;;  %v2462_v8 = vld [vmem:[%s5272_s2 + $0x5a8] sm:$0xff] }
 0x13f   : > { %2893 = vmatprep.subr.mxu1 %v2363_v11  ;;  %2928 = vmatprep.subr.mxu0 %v2395_v12  ;;  %v2414_v9 = vld [vmem:[%s5272_s2 + $0x428] sm:$0xff]  ;;  %v2429_v11 = vld [vmem:[%s5272_s2 + $0x4a0] sm:$0xff] }
 0x140   : > { %2894 = vmatpush3.msra.mxu1 %v2347_v15  ;;  %2929 = vmatpush3.msra.mxu0 %v2379_v16  ;;  %v2446_v10 = vld [vmem:[%s5272_s2 + $0x528] sm:$0xff]  ;;  %v2461_v12 = vld [vmem:[%s5272_s2 + $0x5a0] sm:$0xff] }
 0x141   : > { %2895 = vmatprep.subr.mxu1 %v2362_v17  ;;  %2930 = vmatprep.subr.mxu0 %v2394_v18  ;;  %v2413_v15 = vld [vmem:[%s5272_s2 + $0x420] sm:$0xff]  ;;  %v2428_v17 = vld [vmem:[%s5272_s2 + $0x498] sm:$0xff] }
 0x142   : > { %2896 = vmatpush3.msra.mxu1 %v2346_v19  ;;  %2931 = vmatpush3.msra.mxu0 %v2378_v20  ;;  %v2445_v16 = vld [vmem:[%s5272_s2 + $0x520] sm:$0xff]  ;;  %v2460_v18 = vld [vmem:[%s5272_s2 + $0x598] sm:$0xff] }
 0x143   : > { %2897 = vmatprep.subr.mxu1 %v2361_v22  ;;  %2932 = vmatprep.subr.mxu0 %v2393_v23  ;;  %v2412_v19 = vld [vmem:[%s5272_s2 + $0x418] sm:$0xff]  ;;  %v2427_v22 = vld [vmem:[%s5272_s2 + $0x490] sm:$0xff] }
 0x144   : > { %2898 = vmatpush3.msra.mxu1 %v2345_v25  ;;  %2933 = vmatpush3.msra.mxu0 %v2377_v26  ;;  %v2444_v20 = vld [vmem:[%s5272_s2 + $0x518] sm:$0xff]  ;;  %v2459_v23 = vld [vmem:[%s5272_s2 + $0x590] sm:$0xff] }
 0x145   : > { %709 = vmatmul.mubr.f32.vlgmr.msra.gmra.mxu1 %v637_v28  ;;  %826 = vmatmul.mubr.f32.vlgmr.msra.gmra.mxu0 %v754_v29  ;;  %v2411_v25 = vld [vmem:[%s5272_s2 + $0x410] sm:$0xff]  ;;  %v2426_v28 = vld [vmem:[%s5272_s2 + $0x488] sm:$0xff] }
 0x146   : > { %2937 = vmatprep.subr.mxu1 %v2440_v30  ;;  %2972 = vmatprep.subr.mxu0 %v2472_v31  ;;  %v2443_v26 = vld [vmem:[%s5272_s2 + $0x510] sm:$0xff]  ;;  %v2458_v29 = vld [vmem:[%s5272_s2 + $0x588] sm:$0xff] }
 0x147   : > { %2938 = vmatpush3.msra.mxu1 %v2424_v21  ;;  %942 = vmatprep.mubr.f32.mxu1 %v875_v24  ;;  %v2410_v30 = vld [vmem:[%s5272_s2 + $0x408] sm:$0xff]  ;;  %v2425_v21 = vld [vmem:[%s5272_s2 + $0x480] sm:$0xff] }
 0x148   : > { %2973 = vmatpush3.msra.mxu0 %v2456_v33  ;;  %1059 = vmatprep.mubr.f32.mxu0 %v992_v34  ;;  %v2442_v31 = vld [vmem:[%s5272_s2 + $0x508] sm:$0xff]  ;;  %v2457_v24 = vld [vmem:[%s5272_s2 + $0x580] sm:$0xff] }
 0x149   : > { %2939 = vmatprep.subr.mxu1 %v2439_v35  ;;  %2974 = vmatprep.subr.mxu0 %v2471_v36  ;;  %v2409_v33 = vld [vmem:[%s5272_s2 + $0x400] sm:$0xff]  ;;  %v871_v36 = vrot.slane %v4005_v27, %v3803_v13  ;;  %v2488_v27 = vld [vmem:[%s5272_s2 + $0x678] sm:$0xff] }
 0x14a   : > { %2940 = vmatpush3.msra.mxu1 %v2423_v37  ;;  %2975 = vmatpush3.msra.mxu0 %v2455_v38  ;;  %v2441_v34 = vld [vmem:[%s5272_s2 + $0x500] sm:$0xff]  ;;  %v988_v37 = vrot.slane %v4017_v32, %v3803_v13  ;;  %v2504_v38 = vld [vmem:[%s5272_s2 + $0x6f8] sm:$0xff] }
 0x14b   : > { %2941 = vmatprep.subr.mxu1 %v2438_v39  ;;  %2976 = vmatprep.subr.mxu0 %v2470_v40  ;;  %v4209_v35 = vld [vmem:[#allocation2 + $0x6] ss:$8 sm:$0x3]  ;;  %v2536_v39 = vld [vmem:[%s5272_s2 + $0x7f8] sm:$0xff] }
 0x14c   : > { %2942 = vmatpush3.msra.mxu1 %v2422_v41  ;;  %2977 = vmatpush3.msra.mxu0 %v2454_v42  ;;  %v4221_v40 = vld [vmem:[#allocation2 + $0x7] ss:$8 sm:$0x3]  ;;  %v1109_v32 = vrot.slane %v4209_v35, %v3805_v14  ;;  %v2520_v41 = vld [vmem:[%s5272_s2 + $0x778] sm:$0xff] }
 0x14d   : > { %2943 = vmatprep.subr.mxu1 %v2437_v43  ;;  %2978 = vmatprep.subr.mxu0 %v2469_v44  ;;  %v1226_v42 = vrot.slane %v4221_v40, %v3805_v14  ;;  %v2503_v43 = vld [vmem:[%s5272_s2 + $0x6f0] sm:$0xff] }
 0x14e   : > { %2944 = vmatpush3.msra.mxu1 %v2421_v45  ;;  %2979 = vmatpush3.msra.mxu0 %v2453_v46  ;;  %v2535_v44 = vld [vmem:[%s5272_s2 + $0x7f0] sm:$0xff] }
 0x14f   : > { %2945 = vmatprep.subr.mxu1 %v2436_v47  ;;  %2980 = vmatprep.subr.mxu0 %v2468_v48  ;;  %v2487_v45 = vld [vmem:[%s5272_s2 + $0x670] sm:$0xff]  ;;  %v2502_v47 = vld [vmem:[%s5272_s2 + $0x6e8] sm:$0xff] }
 0x150   : > { %2946 = vmatpush3.msra.mxu1 %v2420_v49  ;;  %2981 = vmatpush3.msra.mxu0 %v2452_v50  ;;  %v2519_v46 = vld [vmem:[%s5272_s2 + $0x770] sm:$0xff]  ;;  %v2534_v48 = vld [vmem:[%s5272_s2 + $0x7e8] sm:$0xff] }
 0x151   : > { %2947 = vmatprep.subr.mxu1 %v2435_v51  ;;  %2982 = vmatprep.subr.mxu0 %v2467_v52  ;;  %v2486_v49 = vld [vmem:[%s5272_s2 + $0x668] sm:$0xff]  ;;  %v2501_v51 = vld [vmem:[%s5272_s2 + $0x6e0] sm:$0xff] }
 0x152   : > { %2948 = vmatpush3.msra.mxu1 %v2419_v53  ;;  %2983 = vmatpush3.msra.mxu0 %v2451_v54  ;;  %v2518_v50 = vld [vmem:[%s5272_s2 + $0x768] sm:$0xff]  ;;  %v2533_v52 = vld [vmem:[%s5272_s2 + $0x7e0] sm:$0xff] }
 0x153   : > { %2949 = vmatprep.subr.mxu1 %v2434_v55  ;;  %2984 = vmatprep.subr.mxu0 %v2466_v56  ;;  %v2485_v53 = vld [vmem:[%s5272_s2 + $0x660] sm:$0xff]  ;;  %v2500_v55 = vld [vmem:[%s5272_s2 + $0x6d8] sm:$0xff] }
 0x154   : > { %2950 = vmatpush3.msra.mxu1 %v2418_v57  ;;  %2985 = vmatpush3.msra.mxu0 %v2450_v58  ;;  %v2517_v54 = vld [vmem:[%s5272_s2 + $0x760] sm:$0xff]  ;;  %v2532_v56 = vld [vmem:[%s5272_s2 + $0x7d8] sm:$0xff] }
 0x155   : > { %2951 = vmatprep.subr.mxu1 %v2433_v59  ;;  %2986 = vmatprep.subr.mxu0 %v2465_v60  ;;  %v2484_v57 = vld [vmem:[%s5272_s2 + $0x658] sm:$0xff]  ;;  %v2499_v59 = vld [vmem:[%s5272_s2 + $0x6d0] sm:$0xff] }
 0x156   : > { %2952 = vmatpush3.msra.mxu1 %v2417_v61  ;;  %2987 = vmatpush3.msra.mxu0 %v2449_v62  ;;  %v2516_v58 = vld [vmem:[%s5272_s2 + $0x758] sm:$0xff]  ;;  %v2531_v60 = vld [vmem:[%s5272_s2 + $0x7d0] sm:$0xff] }
 0x157   : > { %2953 = vmatprep.subr.mxu1 %v2432_v63  ;;  %2988 = vmatprep.subr.mxu0 %v2464_v0  ;;  %v2483_v61 = vld [vmem:[%s5272_s2 + $0x650] sm:$0xff]  ;;  %v2498_v63 = vld [vmem:[%s5272_s2 + $0x6c8] sm:$0xff] }
 0x158   : > { %2954 = vmatpush3.msra.mxu1 %v2416_v1  ;;  %2989 = vmatpush3.msra.mxu0 %v2448_v2  ;;  %v2515_v62 = vld [vmem:[%s5272_s2 + $0x750] sm:$0xff]  ;;  %v2530_v0 = vld [vmem:[%s5272_s2 + $0x7c8] sm:$0xff] }
 0x159   : > { %2955 = vmatprep.subr.mxu1 %v2431_v3  ;;  %2990 = vmatprep.subr.mxu0 %v2463_v4  ;;  %v2482_v1 = vld [vmem:[%s5272_s2 + $0x648] sm:$0xff]  ;;  %v2497_v3 = vld [vmem:[%s5272_s2 + $0x6c0] sm:$0xff] }
 0x15a   : > { %2956 = vmatpush3.msra.mxu1 %v2415_v5  ;;  %2991 = vmatpush3.msra.mxu0 %v2447_v6  ;;  %v2514_v2 = vld [vmem:[%s5272_s2 + $0x748] sm:$0xff]  ;;  %v2529_v4 = vld [vmem:[%s5272_s2 + $0x7c0] sm:$0xff] }
 0x15b   : > { %2957 = vmatprep.subr.mxu1 %v2430_v7  ;;  %2992 = vmatprep.subr.mxu0 %v2462_v8  ;;  %v2481_v5 = vld [vmem:[%s5272_s2 + $0x640] sm:$0xff]  ;;  %v2496_v7 = vld [vmem:[%s5272_s2 + $0x6b8] sm:$0xff] }
 0x15c   : > { %2958 = vmatpush3.msra.mxu1 %v2414_v9  ;;  %2993 = vmatpush3.msra.mxu0 %v2446_v10  ;;  %v2513_v6 = vld [vmem:[%s5272_s2 + $0x740] sm:$0xff]  ;;  %v2528_v8 = vld [vmem:[%s5272_s2 + $0x7b8] sm:$0xff] }
 0x15d   : > { %2959 = vmatprep.subr.mxu1 %v2429_v11  ;;  %2994 = vmatprep.subr.mxu0 %v2461_v12  ;;  %v2480_v9 = vld [vmem:[%s5272_s2 + $0x638] sm:$0xff]  ;;  %v2495_v11 = vld [vmem:[%s5272_s2 + $0x6b0] sm:$0xff] }
 0x15e   : > { %2960 = vmatpush3.msra.mxu1 %v2413_v15  ;;  %2995 = vmatpush3.msra.mxu0 %v2445_v16  ;;  %v2512_v10 = vld [vmem:[%s5272_s2 + $0x738] sm:$0xff]  ;;  %v2527_v12 = vld [vmem:[%s5272_s2 + $0x7b0] sm:$0xff] }
 0x15f   : > { %2961 = vmatprep.subr.mxu1 %v2428_v17  ;;  %2996 = vmatprep.subr.mxu0 %v2460_v18  ;;  %v2479_v15 = vld [vmem:[%s5272_s2 + $0x630] sm:$0xff]  ;;  %v2494_v17 = vld [vmem:[%s5272_s2 + $0x6a8] sm:$0xff] }
 0x160   : > { %2962 = vmatpush3.msra.mxu1 %v2412_v19  ;;  %2997 = vmatpush3.msra.mxu0 %v2444_v20  ;;  %v2511_v16 = vld [vmem:[%s5272_s2 + $0x730] sm:$0xff]  ;;  %v2526_v18 = vld [vmem:[%s5272_s2 + $0x7a8] sm:$0xff] }
 0x161   : > { %2963 = vmatprep.subr.mxu1 %v2427_v22  ;;  %2998 = vmatprep.subr.mxu0 %v2459_v23  ;;  %v2478_v19 = vld [vmem:[%s5272_s2 + $0x628] sm:$0xff]  ;;  %v2493_v22 = vld [vmem:[%s5272_s2 + $0x6a0] sm:$0xff] }
 0x162   : > { %2964 = vmatpush3.msra.mxu1 %v2411_v25  ;;  %2999 = vmatpush3.msra.mxu0 %v2443_v26  ;;  %v2510_v20 = vld [vmem:[%s5272_s2 + $0x728] sm:$0xff]  ;;  %v2525_v23 = vld [vmem:[%s5272_s2 + $0x7a0] sm:$0xff] }
 0x163   : > { %2965 = vmatprep.subr.mxu1 %v2426_v28  ;;  %3000 = vmatprep.subr.mxu0 %v2458_v29  ;;  %v2477_v25 = vld [vmem:[%s5272_s2 + $0x620] sm:$0xff]  ;;  %v2492_v28 = vld [vmem:[%s5272_s2 + $0x698] sm:$0xff] }
 0x164   : > { %2966 = vmatpush3.msra.mxu1 %v2410_v30  ;;  %3001 = vmatpush3.msra.mxu0 %v2442_v31  ;;  %v2509_v26 = vld [vmem:[%s5272_s2 + $0x720] sm:$0xff]  ;;  %v2524_v29 = vld [vmem:[%s5272_s2 + $0x798] sm:$0xff] }
 0x165   : > { %2967 = vmatprep.subr.mxu1 %v2425_v21  ;;  %3002 = vmatprep.subr.mxu0 %v2457_v24  ;;  %v2476_v30 = vld [vmem:[%s5272_s2 + $0x618] sm:$0xff]  ;;  %v2491_v21 = vld [vmem:[%s5272_s2 + $0x690] sm:$0xff] }
 0x166   : > { %2968 = vmatpush3.msra.mxu1 %v2409_v33  ;;  %3003 = vmatpush3.msra.mxu0 %v2441_v34  ;;  %v2508_v31 = vld [vmem:[%s5272_s2 + $0x718] sm:$0xff]  ;;  %v2523_v24 = vld [vmem:[%s5272_s2 + $0x790] sm:$0xff] }
 0x167   : > { %943 = vmatmul.mubr.f32.vlgmr.msra.gmra.mxu1 %v871_v36  ;;  %1060 = vmatmul.mubr.f32.vlgmr.msra.gmra.mxu0 %v988_v37  ;;  %v2475_v33 = vld [vmem:[%s5272_s2 + $0x610] sm:$0xff]  ;;  %v2490_v36 = vld [vmem:[%s5272_s2 + $0x688] sm:$0xff] }
 0x168   : > { %3007 = vmatprep.subr.mxu1 %v2504_v38  ;;  %3042 = vmatprep.subr.mxu0 %v2536_v39  ;;  %v2507_v34 = vld [vmem:[%s5272_s2 + $0x710] sm:$0xff]  ;;  %v2522_v37 = vld [vmem:[%s5272_s2 + $0x788] sm:$0xff] }
 0x169   : > { %3008 = vmatpush3.msra.mxu1 %v2488_v27  ;;  %1176 = vmatprep.mubr.f32.mxu1 %v1109_v32  ;;  %v2474_v38 = vld [vmem:[%s5272_s2 + $0x608] sm:$0xff]  ;;  %v2489_v27 = vld [vmem:[%s5272_s2 + $0x680] sm:$0xff] }
 0x16a   : > { %3043 = vmatpush3.msra.mxu0 %v2520_v41  ;;  %1293 = vmatprep.mubr.f32.mxu0 %v1226_v42  ;;  %v2506_v39 = vld [vmem:[%s5272_s2 + $0x708] sm:$0xff]  ;;  %v2521_v32 = vld [vmem:[%s5272_s2 + $0x780] sm:$0xff] }
 0x16b   : > { %3009 = vmatprep.subr.mxu1 %v2503_v43  ;;  %3044 = vmatprep.subr.mxu0 %v2535_v44  ;;  %v2473_v41 = vld [vmem:[%s5272_s2 + $0x600] sm:$0xff]  ;;  %v4413_v43 = vld [vmem:[#allocation2 + $0x10] ss:$8 sm:$0x3]  ;;  %v1105_v44 = vrot.slane %v4209_v35, %v3803_v13 }
 0x16c   : > { %3010 = vmatpush3.msra.mxu1 %v2487_v45  ;;  %3045 = vmatpush3.msra.mxu0 %v2519_v46  ;;  %v2505_v42 = vld [vmem:[%s5272_s2 + $0x700] sm:$0xff]  ;;  %v1222_v45 = vrot.slane %v4221_v40, %v3803_v13  ;;  %v2568_v46 = vld [vmem:[%s5272_s2 + $0x8f8] sm:$0xff]  ;;  %v1343_v40 = vrot.slane %v4413_v43, %v3805_v14 }
 0x16d   : > { %3011 = vmatprep.subr.mxu1 %v2502_v47  ;;  %3046 = vmatprep.subr.mxu0 %v2534_v48  ;;  %v2600_v47 = vld [vmem:[%s5272_s2 + $0x9f8] sm:$0xff] }
 0x16e   : > { %3012 = vmatpush3.msra.mxu1 %v2486_v49  ;;  %3047 = vmatpush3.msra.mxu0 %v2518_v50  ;;  %v4425_v48 = vld [vmem:[#allocation2 + $0x11] ss:$8 sm:$0x3] }
 0x16f   : > { %3013 = vmatprep.subr.mxu1 %v2501_v51  ;;  %3048 = vmatprep.subr.mxu0 %v2533_v52  ;;  %v2552_v35 = vld [vmem:[%s5272_s2 + $0x878] sm:$0xff]  ;;  %v1460_v50 = vrot.slane %v4425_v48, %v3805_v14  ;;  %v2567_v51 = vld [vmem:[%s5272_s2 + $0x8f0] sm:$0xff] }
 0x170   : > { %3014 = vmatpush3.msra.mxu1 %v2485_v53  ;;  %3049 = vmatpush3.msra.mxu0 %v2517_v54  ;;  %v2584_v49 = vld [vmem:[%s5272_s2 + $0x978] sm:$0xff]  ;;  %v2599_v52 = vld [vmem:[%s5272_s2 + $0x9f0] sm:$0xff] }
 0x171   : > { %3015 = vmatprep.subr.mxu1 %v2500_v55  ;;  %3050 = vmatprep.subr.mxu0 %v2532_v56  ;;  %v2551_v53 = vld [vmem:[%s5272_s2 + $0x870] sm:$0xff]  ;;  %v2566_v55 = vld [vmem:[%s5272_s2 + $0x8e8] sm:$0xff] }
 0x172   : > { %3016 = vmatpush3.msra.mxu1 %v2484_v57  ;;  %3051 = vmatpush3.msra.mxu0 %v2516_v58  ;;  %v2583_v54 = vld [vmem:[%s5272_s2 + $0x970] sm:$0xff]  ;;  %v2598_v56 = vld [vmem:[%s5272_s2 + $0x9e8] sm:$0xff] }
 0x173   : > { %3017 = vmatprep.subr.mxu1 %v2499_v59  ;;  %3052 = vmatprep.subr.mxu0 %v2531_v60  ;;  %v2550_v57 = vld [vmem:[%s5272_s2 + $0x868] sm:$0xff]  ;;  %v2565_v59 = vld [vmem:[%s5272_s2 + $0x8e0] sm:$0xff] }
 0x174   : > { %3018 = vmatpush3.msra.mxu1 %v2483_v61  ;;  %3053 = vmatpush3.msra.mxu0 %v2515_v62  ;;  %v2582_v58 = vld [vmem:[%s5272_s2 + $0x968] sm:$0xff]  ;;  %v2597_v60 = vld [vmem:[%s5272_s2 + $0x9e0] sm:$0xff] }
 0x175   : > { %3019 = vmatprep.subr.mxu1 %v2498_v63  ;;  %3054 = vmatprep.subr.mxu0 %v2530_v0  ;;  %v2549_v61 = vld [vmem:[%s5272_s2 + $0x860] sm:$0xff]  ;;  %v2564_v63 = vld [vmem:[%s5272_s2 + $0x8d8] sm:$0xff] }
 0x176   : > { %3020 = vmatpush3.msra.mxu1 %v2482_v1  ;;  %3055 = vmatpush3.msra.mxu0 %v2514_v2  ;;  %v2581_v62 = vld [vmem:[%s5272_s2 + $0x960] sm:$0xff]  ;;  %v2596_v0 = vld [vmem:[%s5272_s2 + $0x9d8] sm:$0xff] }
 0x177   : > { %3021 = vmatprep.subr.mxu1 %v2497_v3  ;;  %3056 = vmatprep.subr.mxu0 %v2529_v4  ;;  %v2548_v1 = vld [vmem:[%s5272_s2 + $0x858] sm:$0xff]  ;;  %v2563_v3 = vld [vmem:[%s5272_s2 + $0x8d0] sm:$0xff] }
 0x178   : > { %3022 = vmatpush3.msra.mxu1 %v2481_v5  ;;  %3057 = vmatpush3.msra.mxu0 %v2513_v6  ;;  %v2580_v2 = vld [vmem:[%s5272_s2 + $0x958] sm:$0xff]  ;;  %v2595_v4 = vld [vmem:[%s5272_s2 + $0x9d0] sm:$0xff] }
 0x179   : > { %3023 = vmatprep.subr.mxu1 %v2496_v7  ;;  %3058 = vmatprep.subr.mxu0 %v2528_v8  ;;  %v2547_v5 = vld [vmem:[%s5272_s2 + $0x850] sm:$0xff]  ;;  %v2562_v7 = vld [vmem:[%s5272_s2 + $0x8c8] sm:$0xff] }
 0x17a   : > { %3024 = vmatpush3.msra.mxu1 %v2480_v9  ;;  %3059 = vmatpush3.msra.mxu0 %v2512_v10  ;;  %v2579_v6 = vld [vmem:[%s5272_s2 + $0x950] sm:$0xff]  ;;  %v2594_v8 = vld [vmem:[%s5272_s2 + $0x9c8] sm:$0xff] }
 0x17b   : > { %3025 = vmatprep.subr.mxu1 %v2495_v11  ;;  %3060 = vmatprep.subr.mxu0 %v2527_v12  ;;  %v2546_v9 = vld [vmem:[%s5272_s2 + $0x848] sm:$0xff]  ;;  %v2561_v11 = vld [vmem:[%s5272_s2 + $0x8c0] sm:$0xff] }
 0x17c   : > { %3026 = vmatpush3.msra.mxu1 %v2479_v15  ;;  %3061 = vmatpush3.msra.mxu0 %v2511_v16  ;;  %v2578_v10 = vld [vmem:[%s5272_s2 + $0x948] sm:$0xff]  ;;  %v2593_v12 = vld [vmem:[%s5272_s2 + $0x9c0] sm:$0xff] }
 0x17d   : > { %3027 = vmatprep.subr.mxu1 %v2494_v17  ;;  %3062 = vmatprep.subr.mxu0 %v2526_v18  ;;  %v2545_v15 = vld [vmem:[%s5272_s2 + $0x840] sm:$0xff]  ;;  %v2560_v17 = vld [vmem:[%s5272_s2 + $0x8b8] sm:$0xff] }
 0x17e   : > { %3028 = vmatpush3.msra.mxu1 %v2478_v19  ;;  %3063 = vmatpush3.msra.mxu0 %v2510_v20  ;;  %v2577_v16 = vld [vmem:[%s5272_s2 + $0x940] sm:$0xff]  ;;  %v2592_v18 = vld [vmem:[%s5272_s2 + $0x9b8] sm:$0xff] }
 0x17f   : > { %3029 = vmatprep.subr.mxu1 %v2493_v22  ;;  %3064 = vmatprep.subr.mxu0 %v2525_v23  ;;  %v2544_v19 = vld [vmem:[%s5272_s2 + $0x838] sm:$0xff]  ;;  %v2559_v22 = vld [vmem:[%s5272_s2 + $0x8b0] sm:$0xff] }
 0x180   : > { %3030 = vmatpush3.msra.mxu1 %v2477_v25  ;;  %3065 = vmatpush3.msra.mxu0 %v2509_v26  ;;  %v2576_v20 = vld [vmem:[%s5272_s2 + $0x938] sm:$0xff]  ;;  %v2591_v23 = vld [vmem:[%s5272_s2 + $0x9b0] sm:$0xff] }
 0x181   : > { %3031 = vmatprep.subr.mxu1 %v2492_v28  ;;  %3066 = vmatprep.subr.mxu0 %v2524_v29  ;;  %v2543_v25 = vld [vmem:[%s5272_s2 + $0x830] sm:$0xff]  ;;  %v2558_v28 = vld [vmem:[%s5272_s2 + $0x8a8] sm:$0xff] }
 0x182   : > { %3032 = vmatpush3.msra.mxu1 %v2476_v30  ;;  %3067 = vmatpush3.msra.mxu0 %v2508_v31  ;;  %v2575_v26 = vld [vmem:[%s5272_s2 + $0x930] sm:$0xff]  ;;  %v2590_v29 = vld [vmem:[%s5272_s2 + $0x9a8] sm:$0xff] }
 0x183   : > { %3033 = vmatprep.subr.mxu1 %v2491_v21  ;;  %3068 = vmatprep.subr.mxu0 %v2523_v24  ;;  %v2542_v30 = vld [vmem:[%s5272_s2 + $0x828] sm:$0xff]  ;;  %v2557_v21 = vld [vmem:[%s5272_s2 + $0x8a0] sm:$0xff] }
 0x184   : > { %3034 = vmatpush3.msra.mxu1 %v2475_v33  ;;  %3069 = vmatpush3.msra.mxu0 %v2507_v34  ;;  %v2574_v31 = vld [vmem:[%s5272_s2 + $0x928] sm:$0xff]  ;;  %v2589_v24 = vld [vmem:[%s5272_s2 + $0x9a0] sm:$0xff] }
 0x185   : > { %3035 = vmatprep.subr.mxu1 %v2490_v36  ;;  %3070 = vmatprep.subr.mxu0 %v2522_v37  ;;  %v2541_v33 = vld [vmem:[%s5272_s2 + $0x820] sm:$0xff]  ;;  %v2556_v36 = vld [vmem:[%s5272_s2 + $0x898] sm:$0xff] }
 0x186   : > { %3036 = vmatpush3.msra.mxu1 %v2474_v38  ;;  %3071 = vmatpush3.msra.mxu0 %v2506_v39  ;;  %v2573_v34 = vld [vmem:[%s5272_s2 + $0x920] sm:$0xff]  ;;  %v2588_v37 = vld [vmem:[%s5272_s2 + $0x998] sm:$0xff] }
 0x187   : > { %3037 = vmatprep.subr.mxu1 %v2489_v27  ;;  %3072 = vmatprep.subr.mxu0 %v2521_v32  ;;  %v2540_v38 = vld [vmem:[%s5272_s2 + $0x818] sm:$0xff]  ;;  %v2555_v27 = vld [vmem:[%s5272_s2 + $0x890] sm:$0xff] }
 0x188   : > { %3038 = vmatpush3.msra.mxu1 %v2473_v41  ;;  %3073 = vmatpush3.msra.mxu0 %v2505_v42  ;;  %v2572_v39 = vld [vmem:[%s5272_s2 + $0x918] sm:$0xff]  ;;  %v2587_v32 = vld [vmem:[%s5272_s2 + $0x990] sm:$0xff] }
 0x189   : > { %1177 = vmatmul.mubr.f32.vlgmr.msra.gmra.mxu1 %v1105_v44  ;;  %1294 = vmatmul.mubr.f32.vlgmr.msra.gmra.mxu0 %v1222_v45  ;;  %v2539_v41 = vld [vmem:[%s5272_s2 + $0x810] sm:$0xff]  ;;  %v2554_v44 = vld [vmem:[%s5272_s2 + $0x888] sm:$0xff] }
 0x18a   : > { %3077 = vmatprep.subr.mxu1 %v2568_v46  ;;  %3112 = vmatprep.subr.mxu0 %v2600_v47  ;;  %v2571_v42 = vld [vmem:[%s5272_s2 + $0x910] sm:$0xff]  ;;  %v2586_v45 = vld [vmem:[%s5272_s2 + $0x988] sm:$0xff] }
 0x18b   : > { %3078 = vmatpush3.msra.mxu1 %v2552_v35  ;;  %1410 = vmatprep.mubr.f32.mxu1 %v1343_v40  ;;  %v2538_v46 = vld [vmem:[%s5272_s2 + $0x808] sm:$0xff]  ;;  %v2553_v35 = vld [vmem:[%s5272_s2 + $0x880] sm:$0xff] }
 0x18c   : > { %3113 = vmatpush3.msra.mxu0 %v2584_v49  ;;  %1527 = vmatprep.mubr.f32.mxu0 %v1460_v50  ;;  %v2570_v47 = vld [vmem:[%s5272_s2 + $0x908] sm:$0xff]  ;;  %v2585_v40 = vld [vmem:[%s5272_s2 + $0x980] sm:$0xff] }
 0x18d   : > { %3079 = vmatprep.subr.mxu1 %v2567_v51  ;;  %3114 = vmatprep.subr.mxu0 %v2599_v52  ;;  %v2537_v49 = vld [vmem:[%s5272_s2 + $0x800] sm:$0xff]  ;;  %v4617_v51 = vld [vmem:[#allocation2 + $0x12] ss:$8 sm:$0x3]  ;;  %v1339_v52 = vrot.slane %v4413_v43, %v3803_v13 }
 0x18e   : > { %3080 = vmatpush3.msra.mxu1 %v2551_v53  ;;  %3115 = vmatpush3.msra.mxu0 %v2583_v54  ;;  %v2569_v50 = vld [vmem:[%s5272_s2 + $0x900] sm:$0xff]  ;;  %v1456_v53 = vrot.slane %v4425_v48, %v3803_v13  ;;  %v2632_v54 = vld [vmem:[%s5272_s2 + $0xaf8] sm:$0xff]  ;;  %v1577_v48 = vrot.slane %v4617_v51, %v3805_v14 }
 0x18f   : > { %3081 = vmatprep.subr.mxu1 %v2566_v55  ;;  %3116 = vmatprep.subr.mxu0 %v2598_v56  ;;  %v2664_v55 = vld [vmem:[%s5272_s2 + $0xbf8] sm:$0xff] }
 0x190   : > { %3082 = vmatpush3.msra.mxu1 %v2550_v57  ;;  %3117 = vmatpush3.msra.mxu0 %v2582_v58  ;;  %v4629_v56 = vld [vmem:[#allocation2 + $0x13] ss:$8 sm:$0x3] }
 0x191   : > { %3083 = vmatprep.subr.mxu1 %v2565_v59  ;;  %3118 = vmatprep.subr.mxu0 %v2597_v60  ;;  %v2616_v43 = vld [vmem:[%s5272_s2 + $0xa78] sm:$0xff]  ;;  %v1694_v58 = vrot.slane %v4629_v56, %v3805_v14  ;;  %v2631_v59 = vld [vmem:[%s5272_s2 + $0xaf0] sm:$0xff] }
 0x192   : > { %3084 = vmatpush3.msra.mxu1 %v2549_v61  ;;  %3119 = vmatpush3.msra.mxu0 %v2581_v62  ;;  %v2648_v57 = vld [vmem:[%s5272_s2 + $0xb78] sm:$0xff]  ;;  %v2663_v60 = vld [vmem:[%s5272_s2 + $0xbf0] sm:$0xff] }
 0x193   : > { %3085 = vmatprep.subr.mxu1 %v2564_v63  ;;  %3120 = vmatprep.subr.mxu0 %v2596_v0  ;;  %v2615_v61 = vld [vmem:[%s5272_s2 + $0xa70] sm:$0xff]  ;;  %v2630_v63 = vld [vmem:[%s5272_s2 + $0xae8] sm:$0xff] }
 0x194   : > { %3086 = vmatpush3.msra.mxu1 %v2548_v1  ;;  %3121 = vmatpush3.msra.mxu0 %v2580_v2  ;;  %v2647_v62 = vld [vmem:[%s5272_s2 + $0xb70] sm:$0xff]  ;;  %v2662_v0 = vld [vmem:[%s5272_s2 + $0xbe8] sm:$0xff] }
 0x195   : > { %3087 = vmatprep.subr.mxu1 %v2563_v3  ;;  %3122 = vmatprep.subr.mxu0 %v2595_v4  ;;  %v2614_v1 = vld [vmem:[%s5272_s2 + $0xa68] sm:$0xff]  ;;  %v2629_v3 = vld [vmem:[%s5272_s2 + $0xae0] sm:$0xff] }
 0x196   : > { %3088 = vmatpush3.msra.mxu1 %v2547_v5  ;;  %3123 = vmatpush3.msra.mxu0 %v2579_v6  ;;  %v2646_v2 = vld [vmem:[%s5272_s2 + $0xb68] sm:$0xff]  ;;  %v2661_v4 = vld [vmem:[%s5272_s2 + $0xbe0] sm:$0xff] }
 0x197   : > { %3089 = vmatprep.subr.mxu1 %v2562_v7  ;;  %3124 = vmatprep.subr.mxu0 %v2594_v8  ;;  %v2613_v5 = vld [vmem:[%s5272_s2 + $0xa60] sm:$0xff]  ;;  %v2628_v7 = vld [vmem:[%s5272_s2 + $0xad8] sm:$0xff] }
 0x198   : > { %3090 = vmatpush3.msra.mxu1 %v2546_v9  ;;  %3125 = vmatpush3.msra.mxu0 %v2578_v10  ;;  %v2645_v6 = vld [vmem:[%s5272_s2 + $0xb60] sm:$0xff]  ;;  %v2660_v8 = vld [vmem:[%s5272_s2 + $0xbd8] sm:$0xff] }
 0x199   : > { %3091 = vmatprep.subr.mxu1 %v2561_v11  ;;  %3126 = vmatprep.subr.mxu0 %v2593_v12  ;;  %v2612_v9 = vld [vmem:[%s5272_s2 + $0xa58] sm:$0xff]  ;;  %v2627_v11 = vld [vmem:[%s5272_s2 + $0xad0] sm:$0xff] }
 0x19a   : > { %3092 = vmatpush3.msra.mxu1 %v2545_v15  ;;  %3127 = vmatpush3.msra.mxu0 %v2577_v16  ;;  %v2644_v10 = vld [vmem:[%s5272_s2 + $0xb58] sm:$0xff]  ;;  %v2659_v12 = vld [vmem:[%s5272_s2 + $0xbd0] sm:$0xff] }
 0x19b   : > { %3093 = vmatprep.subr.mxu1 %v2560_v17  ;;  %3128 = vmatprep.subr.mxu0 %v2592_v18  ;;  %v2611_v15 = vld [vmem:[%s5272_s2 + $0xa50] sm:$0xff]  ;;  %v2626_v17 = vld [vmem:[%s5272_s2 + $0xac8] sm:$0xff] }
 0x19c   : > { %3094 = vmatpush3.msra.mxu1 %v2544_v19  ;;  %3129 = vmatpush3.msra.mxu0 %v2576_v20  ;;  %v2643_v16 = vld [vmem:[%s5272_s2 + $0xb50] sm:$0xff]  ;;  %v2658_v18 = vld [vmem:[%s5272_s2 + $0xbc8] sm:$0xff] }
 0x19d   : > { %3095 = vmatprep.subr.mxu1 %v2559_v22  ;;  %3130 = vmatprep.subr.mxu0 %v2591_v23  ;;  %v2610_v19 = vld [vmem:[%s5272_s2 + $0xa48] sm:$0xff]  ;;  %v2625_v22 = vld [vmem:[%s5272_s2 + $0xac0] sm:$0xff] }
 0x19e   : > { %3096 = vmatpush3.msra.mxu1 %v2543_v25  ;;  %3131 = vmatpush3.msra.mxu0 %v2575_v26  ;;  %v2642_v20 = vld [vmem:[%s5272_s2 + $0xb48] sm:$0xff]  ;;  %v2657_v23 = vld [vmem:[%s5272_s2 + $0xbc0] sm:$0xff] }
 0x19f   : > { %3097 = vmatprep.subr.mxu1 %v2558_v28  ;;  %3132 = vmatprep.subr.mxu0 %v2590_v29  ;;  %v2609_v25 = vld [vmem:[%s5272_s2 + $0xa40] sm:$0xff]  ;;  %v2624_v28 = vld [vmem:[%s5272_s2 + $0xab8] sm:$0xff] }
 0x1a0   : > { %3098 = vmatpush3.msra.mxu1 %v2542_v30  ;;  %3133 = vmatpush3.msra.mxu0 %v2574_v31  ;;  %v2641_v26 = vld [vmem:[%s5272_s2 + $0xb40] sm:$0xff]  ;;  %v2656_v29 = vld [vmem:[%s5272_s2 + $0xbb8] sm:$0xff] }
 0x1a1   : > { %3099 = vmatprep.subr.mxu1 %v2557_v21  ;;  %3134 = vmatprep.subr.mxu0 %v2589_v24  ;;  %v2608_v30 = vld [vmem:[%s5272_s2 + $0xa38] sm:$0xff]  ;;  %v2623_v21 = vld [vmem:[%s5272_s2 + $0xab0] sm:$0xff] }
 0x1a2   : > { %3100 = vmatpush3.msra.mxu1 %v2541_v33  ;;  %3135 = vmatpush3.msra.mxu0 %v2573_v34  ;;  %v2640_v31 = vld [vmem:[%s5272_s2 + $0xb38] sm:$0xff]  ;;  %v2655_v24 = vld [vmem:[%s5272_s2 + $0xbb0] sm:$0xff] }
 0x1a3   : > { %3101 = vmatprep.subr.mxu1 %v2556_v36  ;;  %3136 = vmatprep.subr.mxu0 %v2588_v37  ;;  %v2607_v33 = vld [vmem:[%s5272_s2 + $0xa30] sm:$0xff]  ;;  %v2622_v36 = vld [vmem:[%s5272_s2 + $0xaa8] sm:$0xff] }
 0x1a4   : > { %3102 = vmatpush3.msra.mxu1 %v2540_v38  ;;  %3137 = vmatpush3.msra.mxu0 %v2572_v39  ;;  %v2639_v34 = vld [vmem:[%s5272_s2 + $0xb30] sm:$0xff]  ;;  %v2654_v37 = vld [vmem:[%s5272_s2 + $0xba8] sm:$0xff] }
 0x1a5   : > { %3103 = vmatprep.subr.mxu1 %v2555_v27  ;;  %3138 = vmatprep.subr.mxu0 %v2587_v32  ;;  %v2606_v38 = vld [vmem:[%s5272_s2 + $0xa28] sm:$0xff]  ;;  %v2621_v27 = vld [vmem:[%s5272_s2 + $0xaa0] sm:$0xff] }
 0x1a6   : > { %3104 = vmatpush3.msra.mxu1 %v2539_v41  ;;  %3139 = vmatpush3.msra.mxu0 %v2571_v42  ;;  %v2638_v39 = vld [vmem:[%s5272_s2 + $0xb28] sm:$0xff]  ;;  %v2653_v32 = vld [vmem:[%s5272_s2 + $0xba0] sm:$0xff] }
 0x1a7   : > { %3105 = vmatprep.subr.mxu1 %v2554_v44  ;;  %3140 = vmatprep.subr.mxu0 %v2586_v45  ;;  %v2605_v41 = vld [vmem:[%s5272_s2 + $0xa20] sm:$0xff]  ;;  %v2620_v44 = vld [vmem:[%s5272_s2 + $0xa98] sm:$0xff] }
 0x1a8   : > { %3106 = vmatpush3.msra.mxu1 %v2538_v46  ;;  %3141 = vmatpush3.msra.mxu0 %v2570_v47  ;;  %v2637_v42 = vld [vmem:[%s5272_s2 + $0xb20] sm:$0xff]  ;;  %v2652_v45 = vld [vmem:[%s5272_s2 + $0xb98] sm:$0xff] }
 0x1a9   : > { %3107 = vmatprep.subr.mxu1 %v2553_v35  ;;  %3142 = vmatprep.subr.mxu0 %v2585_v40  ;;  %v2604_v46 = vld [vmem:[%s5272_s2 + $0xa18] sm:$0xff]  ;;  %v2619_v35 = vld [vmem:[%s5272_s2 + $0xa90] sm:$0xff] }
 0x1aa   : > { %3108 = vmatpush3.msra.mxu1 %v2537_v49  ;;  %3143 = vmatpush3.msra.mxu0 %v2569_v50  ;;  %v2636_v47 = vld [vmem:[%s5272_s2 + $0xb18] sm:$0xff]  ;;  %v2651_v40 = vld [vmem:[%s5272_s2 + $0xb90] sm:$0xff] }
 0x1ab   : > { %1411 = vmatmul.mubr.f32.vlgmr.msra.gmra.mxu1 %v1339_v52  ;;  %1528 = vmatmul.mubr.f32.vlgmr.msra.gmra.mxu0 %v1456_v53  ;;  %v2603_v49 = vld [vmem:[%s5272_s2 + $0xa10] sm:$0xff]  ;;  %v2618_v52 = vld [vmem:[%s5272_s2 + $0xa88] sm:$0xff] }
 0x1ac   : > { %3147 = vmatprep.subr.mxu1 %v2632_v54  ;;  %3182 = vmatprep.subr.mxu0 %v2664_v55  ;;  %v2635_v50 = vld [vmem:[%s5272_s2 + $0xb10] sm:$0xff]  ;;  %v2650_v53 = vld [vmem:[%s5272_s2 + $0xb88] sm:$0xff] }
 0x1ad   : > { %3148 = vmatpush3.msra.mxu1 %v2616_v43  ;;  %1644 = vmatprep.mubr.f32.mxu1 %v1577_v48  ;;  %v2602_v54 = vld [vmem:[%s5272_s2 + $0xa08] sm:$0xff]  ;;  %v2617_v43 = vld [vmem:[%s5272_s2 + $0xa80] sm:$0xff] }
 0x1ae   : > { %3183 = vmatpush3.msra.mxu0 %v2648_v57  ;;  %1761 = vmatprep.mubr.f32.mxu0 %v1694_v58  ;;  %v2634_v55 = vld [vmem:[%s5272_s2 + $0xb08] sm:$0xff]  ;;  %v2649_v48 = vld [vmem:[%s5272_s2 + $0xb80] sm:$0xff] }
 0x1af   : > { %3149 = vmatprep.subr.mxu1 %v2631_v59  ;;  %3184 = vmatprep.subr.mxu0 %v2663_v60  ;;  %v2601_v57 = vld [vmem:[%s5272_s2 + $0xa00] sm:$0xff]  ;;  %v4821_v59 = vld [vmem:[#allocation2 + $0x14] ss:$8 sm:$0x3]  ;;  %v1573_v60 = vrot.slane %v4617_v51, %v3803_v13 }
 0x1b0   : > { %3150 = vmatpush3.msra.mxu1 %v2615_v61  ;;  %3185 = vmatpush3.msra.mxu0 %v2647_v62  ;;  %v2633_v58 = vld [vmem:[%s5272_s2 + $0xb00] sm:$0xff]  ;;  %v1690_v61 = vrot.slane %v4629_v56, %v3803_v13  ;;  %v2696_v62 = vld [vmem:[%s5272_s2 + $0xcf8] sm:$0xff]  ;;  %v1811_v56 = vrot.slane %v4821_v59, %v3805_v14 }
 0x1b1   : > { %3151 = vmatprep.subr.mxu1 %v2630_v63  ;;  %3186 = vmatprep.subr.mxu0 %v2662_v0  ;;  %v2728_v63 = vld [vmem:[%s5272_s2 + $0xdf8] sm:$0xff] }
 0x1b2   : > { %3152 = vmatpush3.msra.mxu1 %v2614_v1  ;;  %3187 = vmatpush3.msra.mxu0 %v2646_v2  ;;  %v4833_v0 = vld [vmem:[#allocation2 + $0x15] ss:$8 sm:$0x3] }
 0x1b3   : > { %3153 = vmatprep.subr.mxu1 %v2629_v3  ;;  %3188 = vmatprep.subr.mxu0 %v2661_v4  ;;  %v2680_v51 = vld [vmem:[%s5272_s2 + $0xc78] sm:$0xff]  ;;  %v1928_v2 = vrot.slane %v4833_v0, %v3805_v14  ;;  %v2695_v3 = vld [vmem:[%s5272_s2 + $0xcf0] sm:$0xff] }
 0x1b4   : > { %3154 = vmatpush3.msra.mxu1 %v2613_v5  ;;  %3189 = vmatpush3.msra.mxu0 %v2645_v6  ;;  %v2712_v1 = vld [vmem:[%s5272_s2 + $0xd78] sm:$0xff]  ;;  %v2727_v4 = vld [vmem:[%s5272_s2 + $0xdf0] sm:$0xff] }
 0x1b5   : > { %3155 = vmatprep.subr.mxu1 %v2628_v7  ;;  %3190 = vmatprep.subr.mxu0 %v2660_v8  ;;  %v2679_v5 = vld [vmem:[%s5272_s2 + $0xc70] sm:$0xff]  ;;  %v2694_v7 = vld [vmem:[%s5272_s2 + $0xce8] sm:$0xff] }
 0x1b6   : > { %3156 = vmatpush3.msra.mxu1 %v2612_v9  ;;  %3191 = vmatpush3.msra.mxu0 %v2644_v10  ;;  %v2711_v6 = vld [vmem:[%s5272_s2 + $0xd70] sm:$0xff]  ;;  %v2726_v8 = vld [vmem:[%s5272_s2 + $0xde8] sm:$0xff] }
 0x1b7   : > { %3157 = vmatprep.subr.mxu1 %v2627_v11  ;;  %3192 = vmatprep.subr.mxu0 %v2659_v12  ;;  %v2678_v9 = vld [vmem:[%s5272_s2 + $0xc68] sm:$0xff]  ;;  %v2693_v11 = vld [vmem:[%s5272_s2 + $0xce0] sm:$0xff] }
 0x1b8   : > { %3158 = vmatpush3.msra.mxu1 %v2611_v15  ;;  %3193 = vmatpush3.msra.mxu0 %v2643_v16  ;;  %v2710_v10 = vld [vmem:[%s5272_s2 + $0xd68] sm:$0xff]  ;;  %v2725_v12 = vld [vmem:[%s5272_s2 + $0xde0] sm:$0xff] }
 0x1b9   : > { %3159 = vmatprep.subr.mxu1 %v2626_v17  ;;  %3194 = vmatprep.subr.mxu0 %v2658_v18  ;;  %v2677_v15 = vld [vmem:[%s5272_s2 + $0xc60] sm:$0xff]  ;;  %v2692_v17 = vld [vmem:[%s5272_s2 + $0xcd8] sm:$0xff] }
 0x1ba   : > { %3160 = vmatpush3.msra.mxu1 %v2610_v19  ;;  %3195 = vmatpush3.msra.mxu0 %v2642_v20  ;;  %v2709_v16 = vld [vmem:[%s5272_s2 + $0xd60] sm:$0xff]  ;;  %v2724_v18 = vld [vmem:[%s5272_s2 + $0xdd8] sm:$0xff] }
 0x1bb   : > { %3161 = vmatprep.subr.mxu1 %v2625_v22  ;;  %3196 = vmatprep.subr.mxu0 %v2657_v23  ;;  %v2676_v19 = vld [vmem:[%s5272_s2 + $0xc58] sm:$0xff]  ;;  %v2691_v22 = vld [vmem:[%s5272_s2 + $0xcd0] sm:$0xff] }
 0x1bc   : > { %3162 = vmatpush3.msra.mxu1 %v2609_v25  ;;  %3197 = vmatpush3.msra.mxu0 %v2641_v26  ;;  %v2708_v20 = vld [vmem:[%s5272_s2 + $0xd58] sm:$0xff]  ;;  %v2723_v23 = vld [vmem:[%s5272_s2 + $0xdd0] sm:$0xff] }
 0x1bd   : > { %3163 = vmatprep.subr.mxu1 %v2624_v28  ;;  %3198 = vmatprep.subr.mxu0 %v2656_v29  ;;  %v2675_v25 = vld [vmem:[%s5272_s2 + $0xc50] sm:$0xff]  ;;  %v2690_v28 = vld [vmem:[%s5272_s2 + $0xcc8] sm:$0xff] }
 0x1be   : > { %3164 = vmatpush3.msra.mxu1 %v2608_v30  ;;  %3199 = vmatpush3.msra.mxu0 %v2640_v31  ;;  %v2707_v26 = vld [vmem:[%s5272_s2 + $0xd50] sm:$0xff]  ;;  %v2722_v29 = vld [vmem:[%s5272_s2 + $0xdc8] sm:$0xff] }
 0x1bf   : > { %3165 = vmatprep.subr.mxu1 %v2623_v21  ;;  %3200 = vmatprep.subr.mxu0 %v2655_v24  ;;  %v2674_v30 = vld [vmem:[%s5272_s2 + $0xc48] sm:$0xff]  ;;  %v2689_v21 = vld [vmem:[%s5272_s2 + $0xcc0] sm:$0xff] }
 0x1c0   : > { %3166 = vmatpush3.msra.mxu1 %v2607_v33  ;;  %3201 = vmatpush3.msra.mxu0 %v2639_v34  ;;  %v2706_v31 = vld [vmem:[%s5272_s2 + $0xd48] sm:$0xff]  ;;  %v2721_v24 = vld [vmem:[%s5272_s2 + $0xdc0] sm:$0xff] }
 0x1c1   : > { %3167 = vmatprep.subr.mxu1 %v2622_v36  ;;  %3202 = vmatprep.subr.mxu0 %v2654_v37  ;;  %v2673_v33 = vld [vmem:[%s5272_s2 + $0xc40] sm:$0xff]  ;;  %v2688_v36 = vld [vmem:[%s5272_s2 + $0xcb8] sm:$0xff] }
 0x1c2   : > { %3168 = vmatpush3.msra.mxu1 %v2606_v38  ;;  %3203 = vmatpush3.msra.mxu0 %v2638_v39  ;;  %v2705_v34 = vld [vmem:[%s5272_s2 + $0xd40] sm:$0xff]  ;;  %v2720_v37 = vld [vmem:[%s5272_s2 + $0xdb8] sm:$0xff] }
 0x1c3   : > { %3169 = vmatprep.subr.mxu1 %v2621_v27  ;;  %3204 = vmatprep.subr.mxu0 %v2653_v32  ;;  %v2672_v38 = vld [vmem:[%s5272_s2 + $0xc38] sm:$0xff]  ;;  %v2687_v27 = vld [vmem:[%s5272_s2 + $0xcb0] sm:$0xff] }
 0x1c4   : > { %3170 = vmatpush3.msra.mxu1 %v2605_v41  ;;  %3205 = vmatpush3.msra.mxu0 %v2637_v42  ;;  %v2704_v39 = vld [vmem:[%s5272_s2 + $0xd38] sm:$0xff]  ;;  %v2719_v32 = vld [vmem:[%s5272_s2 + $0xdb0] sm:$0xff] }
 0x1c5   : > { %3171 = vmatprep.subr.mxu1 %v2620_v44  ;;  %3206 = vmatprep.subr.mxu0 %v2652_v45  ;;  %v2671_v41 = vld [vmem:[%s5272_s2 + $0xc30] sm:$0xff]  ;;  %v2686_v44 = vld [vmem:[%s5272_s2 + $0xca8] sm:$0xff] }
 0x1c6   : > { %3172 = vmatpush3.msra.mxu1 %v2604_v46  ;;  %3207 = vmatpush3.msra.mxu0 %v2636_v47  ;;  %v2703_v42 = vld [vmem:[%s5272_s2 + $0xd30] sm:$0xff]  ;;  %v2718_v45 = vld [vmem:[%s5272_s2 + $0xda8] sm:$0xff] }
 0x1c7   : > { %3173 = vmatprep.subr.mxu1 %v2619_v35  ;;  %3208 = vmatprep.subr.mxu0 %v2651_v40  ;;  %v2670_v46 = vld [vmem:[%s5272_s2 + $0xc28] sm:$0xff]  ;;  %v2685_v35 = vld [vmem:[%s5272_s2 + $0xca0] sm:$0xff] }
 0x1c8   : > { %3174 = vmatpush3.msra.mxu1 %v2603_v49  ;;  %3209 = vmatpush3.msra.mxu0 %v2635_v50  ;;  %v2702_v47 = vld [vmem:[%s5272_s2 + $0xd28] sm:$0xff]  ;;  %v2717_v40 = vld [vmem:[%s5272_s2 + $0xda0] sm:$0xff] }
 0x1c9   : > { %3175 = vmatprep.subr.mxu1 %v2618_v52  ;;  %3210 = vmatprep.subr.mxu0 %v2650_v53  ;;  %v2669_v49 = vld [vmem:[%s5272_s2 + $0xc20] sm:$0xff]  ;;  %v2684_v52 = vld [vmem:[%s5272_s2 + $0xc98] sm:$0xff] }
 0x1ca   : > { %3176 = vmatpush3.msra.mxu1 %v2602_v54  ;;  %3211 = vmatpush3.msra.mxu0 %v2634_v55  ;;  %v2701_v50 = vld [vmem:[%s5272_s2 + $0xd20] sm:$0xff]  ;;  %v2716_v53 = vld [vmem:[%s5272_s2 + $0xd98] sm:$0xff] }
 0x1cb   : > { %3177 = vmatprep.subr.mxu1 %v2617_v43  ;;  %3212 = vmatprep.subr.mxu0 %v2649_v48  ;;  %v2668_v54 = vld [vmem:[%s5272_s2 + $0xc18] sm:$0xff]  ;;  %v2683_v43 = vld [vmem:[%s5272_s2 + $0xc90] sm:$0xff] }
 0x1cc   : > { %3178 = vmatpush3.msra.mxu1 %v2601_v57  ;;  %3213 = vmatpush3.msra.mxu0 %v2633_v58  ;;  %v2700_v55 = vld [vmem:[%s5272_s2 + $0xd18] sm:$0xff]  ;;  %v2715_v48 = vld [vmem:[%s5272_s2 + $0xd90] sm:$0xff] }
 0x1cd   : > { %1645 = vmatmul.mubr.f32.vlgmr.msra.gmra.mxu1 %v1573_v60  ;;  %1762 = vmatmul.mubr.f32.vlgmr.msra.gmra.mxu0 %v1690_v61  ;;  %v2667_v57 = vld [vmem:[%s5272_s2 + $0xc10] sm:$0xff]  ;;  %v2682_v60 = vld [vmem:[%s5272_s2 + $0xc88] sm:$0xff] }
 0x1ce   : > { %3217 = vmatprep.subr.mxu1 %v2696_v62  ;;  %3252 = vmatprep.subr.mxu0 %v2728_v63  ;;  %v2699_v58 = vld [vmem:[%s5272_s2 + $0xd10] sm:$0xff]  ;;  %v2714_v61 = vld [vmem:[%s5272_s2 + $0xd88] sm:$0xff] }
 0x1cf   : > { %3218 = vmatpush3.msra.mxu1 %v2680_v51  ;;  %1878 = vmatprep.mubr.f32.mxu1 %v1811_v56  ;;  %v2666_v62 = vld [vmem:[%s5272_s2 + $0xc08] sm:$0xff]  ;;  %v2681_v51 = vld [vmem:[%s5272_s2 + $0xc80] sm:$0xff] }
 0x1d0   : > { %3253 = vmatpush3.msra.mxu0 %v2712_v1  ;;  %1995 = vmatprep.mubr.f32.mxu0 %v1928_v2  ;;  %v2698_v63 = vld [vmem:[%s5272_s2 + $0xd08] sm:$0xff]  ;;  %v2713_v56 = vld [vmem:[%s5272_s2 + $0xd80] sm:$0xff] }
 0x1d1   : > { %3219 = vmatprep.subr.mxu1 %v2695_v3  ;;  %3254 = vmatprep.subr.mxu0 %v2727_v4  ;;  %v2665_v1 = vld [vmem:[%s5272_s2 + $0xc00] sm:$0xff]  ;;  %v5025_v3 = vld [vmem:[#allocation2 + $0x16] ss:$8 sm:$0x3]  ;;  %v1807_v4 = vrot.slane %v4821_v59, %v3803_v13 }
 0x1d2   : > { %3220 = vmatpush3.msra.mxu1 %v2679_v5  ;;  %3255 = vmatpush3.msra.mxu0 %v2711_v6  ;;  %v2697_v2 = vld [vmem:[%s5272_s2 + $0xd00] sm:$0xff]  ;;  %v1924_v5 = vrot.slane %v4833_v0, %v3803_v13  ;;  %v2760_v6 = vld [vmem:[%s5272_s2 + $0xef8] sm:$0xff]  ;;  %v2045_v0 = vrot.slane %v5025_v3, %v3805_v14 }
 0x1d3   : > { %3221 = vmatprep.subr.mxu1 %v2694_v7  ;;  %3256 = vmatprep.subr.mxu0 %v2726_v8  ;;  %v2792_v7 = vld [vmem:[%s5272_s2 + $0xff8] sm:$0xff] }
 0x1d4   : > { %3222 = vmatpush3.msra.mxu1 %v2678_v9  ;;  %3257 = vmatpush3.msra.mxu0 %v2710_v10  ;;  %v5037_v8 = vld [vmem:[#allocation2 + $0x17] ss:$8 sm:$0x3] }
 0x1d5   : > { %3223 = vmatprep.subr.mxu1 %v2693_v11  ;;  %3258 = vmatprep.subr.mxu0 %v2725_v12  ;;  %v2744_v59 = vld [vmem:[%s5272_s2 + $0xe78] sm:$0xff]  ;;  %v2162_v10 = vrot.slane %v5037_v8, %v3805_v14  ;;  %v2759_v11 = vld [vmem:[%s5272_s2 + $0xef0] sm:$0xff]  ;;  %v2758_v14 = vld [vmem:[%s5272_s2 + $0xee8] sm:$0xff] }
 0x1d6   : > { %3224 = vmatpush3.msra.mxu1 %v2677_v15  ;;  %3259 = vmatpush3.msra.mxu0 %v2709_v16  ;;  %v2776_v9 = vld [vmem:[%s5272_s2 + $0xf78] sm:$0xff]  ;;  %v2791_v12 = vld [vmem:[%s5272_s2 + $0xff0] sm:$0xff] }
 0x1d7   : > { %3225 = vmatprep.subr.mxu1 %v2692_v17  ;;  %3260 = vmatprep.subr.mxu0 %v2724_v18  ;;  %v2743_v15 = vld [vmem:[%s5272_s2 + $0xe70] sm:$0xff]  ;;  %v2790_v17 = vld [vmem:[%s5272_s2 + $0xfe8] sm:$0xff] }
 0x1d8   : > { %3226 = vmatpush3.msra.mxu1 %v2676_v19  ;;  %3261 = vmatpush3.msra.mxu0 %v2708_v20  ;;  %v2775_v16 = vld [vmem:[%s5272_s2 + $0xf70] sm:$0xff]  ;;  %v2742_v18 = vld [vmem:[%s5272_s2 + $0xe68] sm:$0xff]  ;;  %v2757_v20 = vld [vmem:[%s5272_s2 + $0xee0] sm:$0xff] }
 0x1d9   : > { %3227 = vmatprep.subr.mxu1 %v2691_v22  ;;  %3262 = vmatprep.subr.mxu0 %v2723_v23  ;;  %v2774_v19 = vld [vmem:[%s5272_s2 + $0xf68] sm:$0xff]  ;;  %v2789_v22 = vld [vmem:[%s5272_s2 + $0xfe0] sm:$0xff] }
 0x1da   : > { %3228 = vmatpush3.msra.mxu1 %v2675_v25  ;;  %3263 = vmatpush3.msra.mxu0 %v2707_v26  ;;  %v2741_v23 = vld [vmem:[%s5272_s2 + $0xe60] sm:$0xff]  ;;  %v2756_v26 = vld [vmem:[%s5272_s2 + $0xed8] sm:$0xff] }
 0x1db   : > { %3229 = vmatprep.subr.mxu1 %v2690_v28  ;;  %3264 = vmatprep.subr.mxu0 %v2722_v29  ;;  %v2773_v25 = vld [vmem:[%s5272_s2 + $0xf60] sm:$0xff]  ;;  %v2788_v28 = vld [vmem:[%s5272_s2 + $0xfd8] sm:$0xff] }
 0x1dc   : > { %3230 = vmatpush3.msra.mxu1 %v2674_v30  ;;  %3265 = vmatpush3.msra.mxu0 %v2706_v31  ;;  %v2740_v29 = vld [vmem:[%s5272_s2 + $0xe58] sm:$0xff]  ;;  %v2755_v31 = vld [vmem:[%s5272_s2 + $0xed0] sm:$0xff] }
 0x1dd   : > { %3231 = vmatprep.subr.mxu1 %v2689_v21  ;;  %3266 = vmatprep.subr.mxu0 %v2721_v24  ;;  %v2772_v30 = vld [vmem:[%s5272_s2 + $0xf58] sm:$0xff]  ;;  %v2787_v21 = vld [vmem:[%s5272_s2 + $0xfd0] sm:$0xff] }
 0x1de   : > { %3232 = vmatpush3.msra.mxu1 %v2673_v33  ;;  %3267 = vmatpush3.msra.mxu0 %v2705_v34  ;;  %v2739_v24 = vld [vmem:[%s5272_s2 + $0xe50] sm:$0xff]  ;;  %v2754_v34 = vld [vmem:[%s5272_s2 + $0xec8] sm:$0xff] }
 0x1df   : > { %3233 = vmatprep.subr.mxu1 %v2688_v36  ;;  %3268 = vmatprep.subr.mxu0 %v2720_v37  ;;  %v2771_v33 = vld [vmem:[%s5272_s2 + $0xf50] sm:$0xff]  ;;  %v2786_v36 = vld [vmem:[%s5272_s2 + $0xfc8] sm:$0xff] }
 0x1e0   : > { %3234 = vmatpush3.msra.mxu1 %v2672_v38  ;;  %3269 = vmatpush3.msra.mxu0 %v2704_v39  ;;  %v2738_v37 = vld [vmem:[%s5272_s2 + $0xe48] sm:$0xff]  ;;  %v2753_v39 = vld [vmem:[%s5272_s2 + $0xec0] sm:$0xff] }
 0x1e1   : > { %3235 = vmatprep.subr.mxu1 %v2687_v27  ;;  %3270 = vmatprep.subr.mxu0 %v2719_v32  ;;  %v2770_v38 = vld [vmem:[%s5272_s2 + $0xf48] sm:$0xff]  ;;  %v2785_v27 = vld [vmem:[%s5272_s2 + $0xfc0] sm:$0xff] }
 0x1e2   : > { %3236 = vmatpush3.msra.mxu1 %v2671_v41  ;;  %3271 = vmatpush3.msra.mxu0 %v2703_v42  ;;  %v2737_v32 = vld [vmem:[%s5272_s2 + $0xe40] sm:$0xff]  ;;  %v2752_v42 = vld [vmem:[%s5272_s2 + $0xeb8] sm:$0xff] }
 0x1e3   : > { %3237 = vmatprep.subr.mxu1 %v2686_v44  ;;  %3272 = vmatprep.subr.mxu0 %v2718_v45  ;;  %v2769_v41 = vld [vmem:[%s5272_s2 + $0xf40] sm:$0xff]  ;;  %v2784_v44 = vld [vmem:[%s5272_s2 + $0xfb8] sm:$0xff] }
 0x1e4   : > { %3238 = vmatpush3.msra.mxu1 %v2670_v46  ;;  %3273 = vmatpush3.msra.mxu0 %v2702_v47  ;;  %v2736_v45 = vld [vmem:[%s5272_s2 + $0xe38] sm:$0xff]  ;;  %v2751_v47 = vld [vmem:[%s5272_s2 + $0xeb0] sm:$0xff] }
 0x1e5   : > { %3239 = vmatprep.subr.mxu1 %v2685_v35  ;;  %3274 = vmatprep.subr.mxu0 %v2717_v40  ;;  %v2768_v46 = vld [vmem:[%s5272_s2 + $0xf38] sm:$0xff]  ;;  %v2783_v35 = vld [vmem:[%s5272_s2 + $0xfb0] sm:$0xff] }
 0x1e6   : > { %3240 = vmatpush3.msra.mxu1 %v2669_v49  ;;  %3275 = vmatpush3.msra.mxu0 %v2701_v50  ;;  %v2735_v40 = vld [vmem:[%s5272_s2 + $0xe30] sm:$0xff]  ;;  %v2750_v50 = vld [vmem:[%s5272_s2 + $0xea8] sm:$0xff] }
 0x1e7   : > { %3241 = vmatprep.subr.mxu1 %v2684_v52  ;;  %3276 = vmatprep.subr.mxu0 %v2716_v53  ;;  %v2767_v49 = vld [vmem:[%s5272_s2 + $0xf30] sm:$0xff]  ;;  %v2782_v52 = vld [vmem:[%s5272_s2 + $0xfa8] sm:$0xff] }
 0x1e8   : > { %3242 = vmatpush3.msra.mxu1 %v2668_v54  ;;  %3277 = vmatpush3.msra.mxu0 %v2700_v55  ;;  %v2734_v53 = vld [vmem:[%s5272_s2 + $0xe28] sm:$0xff]  ;;  %v2749_v55 = vld [vmem:[%s5272_s2 + $0xea0] sm:$0xff] }
 0x1e9   : > { %3243 = vmatprep.subr.mxu1 %v2683_v43  ;;  %3278 = vmatprep.subr.mxu0 %v2715_v48  ;;  %v2766_v54 = vld [vmem:[%s5272_s2 + $0xf28] sm:$0xff]  ;;  %v2781_v43 = vld [vmem:[%s5272_s2 + $0xfa0] sm:$0xff] }
 0x1ea   : > { %3244 = vmatpush3.msra.mxu1 %v2667_v57  ;;  %3279 = vmatpush3.msra.mxu0 %v2699_v58  ;;  %v2733_v48 = vld [vmem:[%s5272_s2 + $0xe20] sm:$0xff]  ;;  %v2748_v58 = vld [vmem:[%s5272_s2 + $0xe98] sm:$0xff] }
 0x1eb   : > { %3245 = vmatprep.subr.mxu1 %v2682_v60  ;;  %3280 = vmatprep.subr.mxu0 %v2714_v61  ;;  %v2765_v57 = vld [vmem:[%s5272_s2 + $0xf20] sm:$0xff]  ;;  %v2780_v60 = vld [vmem:[%s5272_s2 + $0xf98] sm:$0xff] }
 0x1ec   : > { %3246 = vmatpush3.msra.mxu1 %v2666_v62  ;;  %3281 = vmatpush3.msra.mxu0 %v2698_v63  ;;  %v2732_v61 = vld [vmem:[%s5272_s2 + $0xe18] sm:$0xff]  ;;  %v2747_v63 = vld [vmem:[%s5272_s2 + $0xe90] sm:$0xff] }
 0x1ed   : > { %3247 = vmatprep.subr.mxu1 %v2681_v51  ;;  %3282 = vmatprep.subr.mxu0 %v2713_v56  ;;  %v2764_v62 = vld [vmem:[%s5272_s2 + $0xf18] sm:$0xff]  ;;  %v2779_v51 = vld [vmem:[%s5272_s2 + $0xf90] sm:$0xff] }
 0x1ee   : > { %3248 = vmatpush3.msra.mxu1 %v2665_v1  ;;  %3283 = vmatpush3.msra.mxu0 %v2697_v2  ;;  %v2731_v56 = vld [vmem:[%s5272_s2 + $0xe10] sm:$0xff]  ;;  %v2746_v2 = vld [vmem:[%s5272_s2 + $0xe88] sm:$0xff] }
 0x1ef   : > { %1879 = vmatmul.mubr.f32.vlgmr.msra.gmra.mxu1 %v1807_v4  ;;  %1996 = vmatmul.mubr.f32.vlgmr.msra.gmra.mxu0 %v1924_v5  ;;  %v2763_v1 = vld [vmem:[%s5272_s2 + $0xf10] sm:$0xff]  ;;  %v2778_v4 = vld [vmem:[%s5272_s2 + $0xf88] sm:$0xff] }
 0x1f0   : > { %3287 = vmatprep.subr.mxu1 %v2760_v6  ;;  %3322 = vmatprep.subr.mxu0 %v2792_v7  ;;  %v2730_v5 = vld [vmem:[%s5272_s2 + $0xe08] sm:$0xff]  ;;  %v2745_v7 = vld [vmem:[%s5272_s2 + $0xe80] sm:$0xff] }
 0x1f1   : > { %3288 = vmatpush3.msra.mxu1 %v2744_v59  ;;  %2112 = vmatprep.mubr.f32.mxu1 %v2045_v0  ;;  %v2762_v6 = vld [vmem:[%s5272_s2 + $0xf08] sm:$0xff]  ;;  %v2777_v59 = vld [vmem:[%s5272_s2 + $0xf80] sm:$0xff] }
 0x1f2   : > { %3323 = vmatpush3.msra.mxu0 %v2776_v9  ;;  %2229 = vmatprep.mubr.f32.mxu0 %v2162_v10  ;;  %v2729_v0 = vld [vmem:[%s5272_s2 + $0xe00] sm:$0xff]  ;;  %v2041_v10 = vrot.slane %v5025_v3, %v3803_v13 }
 0x1f3   : > { %3289 = vmatprep.subr.mxu1 %v2759_v11  ;;  %3324 = vmatprep.subr.mxu0 %v2791_v12  ;;  %v2761_v9 = vld [vmem:[%s5272_s2 + $0xf00] sm:$0xff]  ;;  %v2158_v11 = vrot.slane %v5037_v8, %v3803_v13  ;;  %v2829_v12 = vpop.f32.mrf.mxu1 }
 0x1f4   : > { %3290 = vmatpush3.msra.mxu1 %v2743_v15  ;;  %3325 = vmatpush3.msra.mxu0 %v2775_v16  ;;  %v2864_v15 = vpop.f32.mrf.mxu0 }
 0x1f5   : > { %3291 = vmatprep.subr.mxu1 %v2758_v14  ;;  %3326 = vmatprep.subr.mxu0 %v2790_v17  ;;  %v2830_v16 = vpop.f32.mrf.mxu1 }
 0x1f6   : > { %3292 = vmatpush3.msra.mxu1 %v2742_v18  ;;  %3327 = vmatpush3.msra.mxu0 %v2774_v19  ;;  %v2865_v17 = vpop.f32.mrf.mxu0  ;;  %v2831_v19 = vadd.f32 %v2830_v16, %v2829_v12 }
 0x1f7   : > { %3293 = vmatprep.subr.mxu1 %v2757_v20  ;;  %3328 = vmatprep.subr.mxu0 %v2789_v22  ;;  %v2866_v20 = vadd.f32 %v2865_v17, %v2864_v15 }
 0x1f8   : > { %3294 = vmatpush3.msra.mxu1 %v2741_v23  ;;  %3329 = vmatpush3.msra.mxu0 %v2773_v25 }
 0x1f9   : > { %3295 = vmatprep.subr.mxu1 %v2756_v26  ;;  %3330 = vmatprep.subr.mxu0 %v2788_v28  ;;  %v595_v25 = vadd.f32 %v2866_v20, %v2831_v19 }
 0x1fa   : > { %3296 = vmatpush3.msra.mxu1 %v2740_v29  ;;  %3331 = vmatpush3.msra.mxu0 %v2772_v30 }
 0x1fb   : > { %3297 = vmatprep.subr.mxu1 %v2755_v31  ;;  %3332 = vmatprep.subr.mxu0 %v2787_v21 }
 0x1fc   : > { %3298 = vmatpush3.msra.mxu1 %v2739_v24  ;;  %3333 = vmatpush3.msra.mxu0 %v2771_v33 }
 0x1fd   : > { %3299 = vmatprep.subr.mxu1 %v2754_v34  ;;  %3334 = vmatprep.subr.mxu0 %v2786_v36 }
 0x1fe   : > { %3300 = vmatpush3.msra.mxu1 %v2738_v37  ;;  %3335 = vmatpush3.msra.mxu0 %v2770_v38 }
 0x1ff   : > { %3301 = vmatprep.subr.mxu1 %v2753_v39  ;;  %3336 = vmatprep.subr.mxu0 %v2785_v27 }
 0x200   : > { %3302 = vmatpush3.msra.mxu1 %v2737_v32  ;;  %3337 = vmatpush3.msra.mxu0 %v2769_v41 }
 0x201   : > { %3303 = vmatprep.subr.mxu1 %v2752_v42  ;;  %3338 = vmatprep.subr.mxu0 %v2784_v44 }
 0x202   : > { %3304 = vmatpush3.msra.mxu1 %v2736_v45  ;;  %3339 = vmatpush3.msra.mxu0 %v2768_v46 }
 0x203   : > { %3305 = vmatprep.subr.mxu1 %v2751_v47  ;;  %3340 = vmatprep.subr.mxu0 %v2783_v35 }
 0x204   : > { %3306 = vmatpush3.msra.mxu1 %v2735_v40  ;;  %3341 = vmatpush3.msra.mxu0 %v2767_v49 }
 0x205   : > { %3307 = vmatprep.subr.mxu1 %v2750_v50  ;;  %3342 = vmatprep.subr.mxu0 %v2782_v52  ;;  %v2899_v14 = vpop.f32.mrf.mxu1  ;;  %v2934_v22 = vpop.f32.mrf.mxu0 }
 0x206   : > { %3308 = vmatpush3.msra.mxu1 %v2734_v53  ;;  %3343 = vmatpush3.msra.mxu0 %v2766_v54 }
 0x207   : > { %3309 = vmatprep.subr.mxu1 %v2749_v55  ;;  %3344 = vmatprep.subr.mxu0 %v2781_v43  ;;  %v2900_v18 = vpop.f32.mrf.mxu1  ;;  %v2935_v26 = vpop.f32.mrf.mxu0 }
 0x208   : > { %3310 = vmatpush3.msra.mxu1 %v2733_v48  ;;  %3345 = vmatpush3.msra.mxu0 %v2765_v57  ;;  %v2901_v3 = vadd.f32 %v2900_v18, %v2899_v14  ;;  %v2936_v30 = vadd.f32 %v2935_v26, %v2934_v22 }
 0x209   : > { %3311 = vmatprep.subr.mxu1 %v2748_v58  ;;  %3346 = vmatprep.subr.mxu0 %v2780_v60 }
 0x20a   : > { %3312 = vmatpush3.msra.mxu1 %v2732_v61  ;;  %3347 = vmatpush3.msra.mxu0 %v2764_v62  ;;  %v714_v8 = vadd.f32 %v2901_v3, %v595_v25 }
 0x20b   : > { %3313 = vmatprep.subr.mxu1 %v2747_v63  ;;  %3348 = vmatprep.subr.mxu0 %v2779_v51 }
 0x20c   : > { %3314 = vmatpush3.msra.mxu1 %v2731_v56  ;;  %3349 = vmatpush3.msra.mxu0 %v2763_v1  ;;  %v831_v21 = vadd.f32 %v2936_v30, %v714_v8 }
 0x20d   : > { %3315 = vmatprep.subr.mxu1 %v2746_v2  ;;  %3350 = vmatprep.subr.mxu0 %v2778_v4 }
 0x20e   : > { %3316 = vmatpush3.msra.mxu1 %v2730_v5  ;;  %3351 = vmatpush3.msra.mxu0 %v2762_v6 }
 0x20f   : > { %3317 = vmatprep.subr.mxu1 %v2745_v7  ;;  %3352 = vmatprep.subr.mxu0 %v2777_v59 }
 0x210   : > { %3318 = vmatpush3.msra.mxu1 %v2729_v0  ;;  %3353 = vmatpush3.msra.mxu0 %v2761_v9 }
 0x211   : > { %2113 = vmatmul.mubr.f32.vlgmr.msra.gmra.mxu1 %v2041_v10  ;;  %2230 = vmatmul.mubr.f32.vlgmr.msra.gmra.mxu0 %v2158_v11  ;;  %v2236_v10 = vld [vmem:[%s5273_s3] sm:$0x1] }
 0x227   : > { %v2969_v23 = vpop.f32.mrf.mxu1  ;;  %v3004_v28 = vpop.f32.mrf.mxu0 }
 0x229   : > { %v2970_v13 = vpop.f32.mrf.mxu1  ;;  %v3005_v24 = vpop.f32.mrf.mxu0 }
 0x22a   : > { %v2971_v31 = vadd.f32 %v2970_v13, %v2969_v23  ;;  %v3006_v38 = vadd.f32 %v3005_v24, %v3004_v28 }
 0x22c   : > { %v948_v34 = vadd.f32 %v2971_v31, %v831_v21 }
 0x22e   : > { %v1065_v27 = vadd.f32 %v3006_v38, %v948_v34 }
 0x249   : > { %v3039_v29 = vpop.f32.mrf.mxu1  ;;  %v3074_v36 = vpop.f32.mrf.mxu0 }
 0x24b   : > { %v3040_v33 = vpop.f32.mrf.mxu1  ;;  %v3075_v32 = vpop.f32.mrf.mxu0 }
 0x24c   : > { %v3041_v39 = vadd.f32 %v3040_v33, %v3039_v29  ;;  %v3076_v46 = vadd.f32 %v3075_v32, %v3074_v36 }
 0x24e   : > { %v1182_v42 = vadd.f32 %v3041_v39, %v1065_v27 }
 0x250   : > { %v1299_v35 = vadd.f32 %v3076_v46, %v1182_v42 }
 0x26b   : > { %v3109_v37 = vpop.f32.mrf.mxu1  ;;  %v3144_v44 = vpop.f32.mrf.mxu0 }
 0x26d   : > { %v3110_v41 = vpop.f32.mrf.mxu1  ;;  %v3145_v40 = vpop.f32.mrf.mxu0 }
 0x26e   : > { %v3111_v47 = vadd.f32 %v3110_v41, %v3109_v37  ;;  %v3146_v54 = vadd.f32 %v3145_v40, %v3144_v44 }
 0x270   : > { %v1416_v50 = vadd.f32 %v3111_v47, %v1299_v35 }
 0x272   : > { %v1533_v43 = vadd.f32 %v3146_v54, %v1416_v50 }
 0x28d   : > { %v3179_v45 = vpop.f32.mrf.mxu1  ;;  %v3214_v52 = vpop.f32.mrf.mxu0 }
 0x28f   : > { %v3180_v49 = vpop.f32.mrf.mxu1  ;;  %v3215_v48 = vpop.f32.mrf.mxu0 }
 0x290   : > { %v3181_v55 = vadd.f32 %v3180_v49, %v3179_v45  ;;  %v3216_v61 = vadd.f32 %v3215_v48, %v3214_v52 }
 0x292   : > { %v1650_v58 = vadd.f32 %v3181_v55, %v1533_v43 }
 0x294   : > { %v1767_v63 = vadd.f32 %v3216_v61, %v1650_v58 }
 0x2af   : > { %v3249_v53 = vpop.f32.mrf.mxu1  ;;  %v3284_v60 = vpop.f32.mrf.mxu0 }
 0x2b1   : > { %v3250_v57 = vpop.f32.mrf.mxu1  ;;  %v3285_v51 = vpop.f32.mrf.mxu0 }
 0x2b2   : > { %v3251_v62 = vadd.f32 %v3250_v57, %v3249_v53  ;;  %v3286_v4 = vadd.f32 %v3285_v51, %v3284_v60 }
 0x2b4   : > { %v1884_v56 = vadd.f32 %v3251_v62, %v1767_v63 }
 0x2b6   : > { %v2001_v7 = vadd.f32 %v3286_v4, %v1884_v56 }
 0x2d1   : > { %v3319_v1 = vpop.f32.mrf.mxu1  ;;  %v3354_v2 = vpop.f32.mrf.mxu0 }
 0x2d3   : > { %v3320_v5 = vpop.f32.mrf.mxu1  ;;  %v3355_v6 = vpop.f32.mrf.mxu0 }
 0x2d4   : > { %v3321_v59 = vadd.f32 %v3320_v5, %v3319_v1  ;;  %v3356_v9 = vadd.f32 %v3355_v6, %v3354_v2 }
 0x2d6   : > { %v2118_v0 = vadd.f32 %v3321_v59, %v2001_v7 }
 0x2d8   : > { %v2235_v11 = vadd.f32 %v3356_v9, %v2118_v0 }
 0x2da   : > { %v2237_v12 = vadd.f32 %v2236_v10, %v2235_v11 }
 0x2dc   : > { %2238 = vst [vmem:[%s189_s13] sm:$0x1] %v2237_v12 }
 0x2dd   : > { %3410 = shalt.err (!%p3407_p3)
}
 0x2de   : > { %s3411_s5 = scalar_lea.hbm %s2250_s23, 16  ;;  %s3415_s8 = scalar_lea.hbm %s5274_s4, 32 }
 0x2df   : > { %p3412_p4 = scmp.ne.s32.totalorder %s2250_s23, %s3411_s5  ;;  %p3416_p9 = scmp.lt.s32.totalorder %s2250_s23, %s5274_s4 }
 0x2e0   : > { %p3417_p10 = scmp.lt.s32.totalorder %s3415_s8, %s3411_s5 }
 0x2e1   : > { %p3413_p7 = pnand %p3412_p4, %p3524_p5 }
 0x2e2   : > { %p3418_p11 = por %p3417_p10, %p3416_p9 }
 0x2e3   : > { %p3414_p8 = pneg %p3413_p7 }
 0x2e5   : > { %p3419_p12 = pnand %p3418_p11, %p3414_p8 }
 0x2e7   : > { %3422 = shalt.err (!%p3419_p12)
}
 0x2e8   : > { %3357 = dma.vmem_to_hbm [thread:$0]  (%p3524_p5), %s2253_s14, 16, %s2250_s23, %s2240_s27  }
 0x2e9 PF: > { %p3363_p13 = scmp.ge.s32.totalorder %s3457_s18, 2  ;;  %s2264_s11 = sand.u32 1, %s3445_s15  }
 0x2ea   : > { %s2265_s12 = scalar_lea.sflag [#allocation4], %s2264_s11 }
 0x2eb   : > { %p3360_p0 = pnand %p3363_p13, %p3528_p6 }
 0x2ed   : > { %p3361_p1 = pneg %p3360_p0 }
 0x2ef   : > { %3440 = dma.done.wait (%p3361_p1), %s2265_s12, 16  }
 0x2f0   : > { %3442 = vsyncadd (%p3361_p1), %s2265_s12, 4294967280  ;;  %p14_p2 = scmp.ge.s32.totalorder %s3511_s21, 4   ;;  %s5277_s15 = smov %s3449_s16 }
 0x2f1   : > { %s5278_s16 = smov %s3453_s17  ;;  %s5279_s17 = smov %s3522_s24 }
 0x2f2   : > { %s5280_s18 = smov %s3511_s21  ;;  %16 = sbr.rel (!%p14_p2) target bundleno = 3 (0x3), region = 101 }
 0x2f7   :  { %2269 = vsyncpa [#allocation4], 1 }
 0x2f8   :  { %2271 = vsyncpa [#allocation4 + $0x1], 1 }

</bundles_post_ra>
